<compile_context>
chip_gen: v6e
topology: v6e:2x2x1
jax: 0.10.0
libtpu: 0.0.40
codegen_flags: <defaults>
</compile_context>

<pallas_src>
import jax
import jax.numpy as jnp
from jax import lax
from jax.experimental import pallas as pl
from jax.experimental.pallas import tpu as pltpu


# Dtype used for MXU matmul operands (accumulation stays f32).  Set to
# jnp.float32 if exact parity with the f32 PyTorch reference is required.
_MXU_DTYPE = jnp.bfloat16

# VMEM sizing: the requested scoped limit is safe on every generation
# (v7x physical VMEM = 64 MiB/core); the block budget additionally keeps the
# streamed / scratch blocks comfortably inside v5e's small default.
_VMEM_LIMIT_BYTES = 32 * 1024 * 1024
_BLOCK_VMEM_BUDGET = 12 * 1024 * 1024


def _pick_t_block(T, B, H):
    """Largest divisor of T that is <= 64 and fits the per-block VMEM budget.

    Never falls back to t_block = T for large T (per perf review): the worst
    case is t_block = 1, which is still correct and VMEM-safe.
    """
    # Per-time-step resident bytes that scale with t_block:
    #   x block (bf16, double-buffered): 2 * B*H*2
    #   gates scratch (f32):             B*4H*4
    per_t = B * H * (2 * 2 + 16)
    cap = min(64, max(1, _BLOCK_VMEM_BUDGET // per_t))
    best = 1
    for cand in range(1, min(T, cap) + 1):
        if T % cand != 0:
            continue
        # Prefer block row-counts that are a multiple of the bf16 sublane tile
        # (16 rows), unless the block covers the whole array.
        if (cand * B) % 16 == 0 or cand == T:
            best = cand
        elif best == 1:
            best = cand
    return best


def _dict_encoder_kernel(x_ref, wih_ref, bih_ref, whh_ref, wf_ref, bf_ref,
                         tag_ref, out_ref, gx_scr, h_scr, c_scr):
    """One T-block of the LSTM recurrence (+ fuse linear on the last block).

    x_ref  : (Tt*B, H) bf16  word embeddings, time-major; rows [t*B:(t+1)*B]
    wih_ref: (H, 4H)   bf16  input->gates weights (transposed; gate order ifgo)
    bih_ref: (1, 4H)   f32   b_ih + b_hh
    whh_ref: (H, 4H)   bf16  hidden->gates weights (transposed)
    wf_ref : (H, H)    bf16  fuse_hiddens weight (transposed)
    bf_ref : (1, H)    f32   fuse_hiddens bias
    tag_ref: (B, H)    f32   tag embedding
    out_ref: (B, H)    f32   output (resident across the T grid axis)
    gx_scr : (Tt*B, 4H) f32  per-block input projection scratch
    h_scr, c_scr: (B, H) f32 state carried across T-blocks
    """
    tb = pl.program_id(0)
    B, H = h_scr.shape
    Tt = x_ref.shape[0] // B

    @pl.when(tb == 0)
    def _init():
        h_scr[...] = jnp.zeros_like(h_scr)
        c_scr[...] = jnp.zeros_like(c_scr)

    # Per-block input projection, computed once before the recurrence (off the
    # serial critical path): one (Tt*B, H) @ (H, 4H) MXU matmul + bias.
    gx_scr[...] = jnp.dot(x_ref[...], wih_ref[...],
                          preferred_element_type=jnp.float32) + bih_ref[...]

    def step(t, carry):
        h_bf, c = carry
        row = pl.multiple_of(t * B, B)
        # Only the recurrent matmul + gate math remain on the serial path.
        gates = gx_scr[pl.ds(row, B), :] + jnp.dot(
            h_bf, whh_ref[...], preferred_element_type=jnp.float32)  # (B, 4H)
        i = jax.nn.sigmoid(gates[:, 0:H])
        f = jax.nn.sigmoid(gates[:, H:2 * H])
        g = jnp.tanh(gates[:, 2 * H:3 * H])
        o = jax.nn.sigmoid(gates[:, 3 * H:4 * H])
        c = f * c + i * g
        # h is only ever consumed by bf16 MXU matmuls -> carry it in bf16.
        h_bf = (o * jnp.tanh(c)).astype(_MXU_DTYPE)
        return h_bf, c

    # h/c live in vregs within the block.  Unroll capped at 8: keeps
    # MXU/EUP/VPU overlap across adjacent steps without spilling the 64-entry
    # vreg file when t_block grows to 32/64.
    h_fin, c_fin = lax.fori_loop(
        0, Tt, step, (h_scr[...].astype(_MXU_DTYPE), c_scr[...]),
        unroll=min(Tt, 8))
    h_scr[...] = h_fin.astype(jnp.float32)
    c_scr[...] = c_fin

    @pl.when(tb == pl.num_programs(0) - 1)
    def _finalize():
        # out = fuse_hiddens(h_T) + tag_emb
        out_ref[...] = (
            jnp.dot(h_fin, wf_ref[...], preferred_element_type=jnp.float32)
            + bf_ref[...]
            + tag_ref[...]
        )


@jax.jit
def dict_encoder_forward(defn, defn_lengths, pos, tag, params):
    """Embedding gathers (XLA) + fused input-projection/LSTM/fuse Pallas kernel."""
    del defn_lengths  # variable_lengths=False -> accepted and ignored (as in PyTorch)
    B, T = defn.shape
    H = params["embed_word"].shape[1]

    # Embedding lookups (gathers) stay in plain JAX / XLA.  Word embeddings are
    # emitted directly in time-major 2-D (T*B, H) bf16 layout so the kernel can
    # stream them without any in-kernel relayout and with ~8x less HBM traffic
    # than v1's precomputed (T, B, 4H) f32 gates_x.
    x_2d = jnp.take(params["embed_word"], defn.T, axis=0)          # (T, B, H)
    x_2d = x_2d.reshape(T * B, H).astype(_MXU_DTYPE)               # (T*B, H) bf16
    tag_emb = jnp.take(params["embed_tag"], tag, axis=0)           # (B, H) f32
    # NOTE: pos_emb / h0 is built in the PyTorch forward but never passed to
    # the encoder (zero initial state is used), so it cannot affect the output
    # and is not computed here.

    # Weights streamed to the kernel (matmul operands in bf16, biases f32).
    w_ih_T = params["w_ih"].T.astype(_MXU_DTYPE)                   # (H, 4H)
    b_gates = (params["b_ih"] + params["b_hh"]).reshape(1, 4 * H).astype(jnp.float32)
    w_hh_T = params["w_hh"].T.astype(_MXU_DTYPE)                   # (H, 4H)
    w_fuse_T = params["w_fuse"].T.astype(_MXU_DTYPE)               # (H, H)
    b_fuse = params["b_fuse"].reshape(1, H).astype(jnp.float32)

    t_block = _pick_t_block(T, B, H)
    grid = (T // t_block,)

    out = pl.pallas_call(
        _dict_encoder_kernel,
        out_shape=jax.ShapeDtypeStruct((B, H), jnp.float32),
        grid_spec=pltpu.PrefetchScalarGridSpec(
            num_scalar_prefetch=0,
            grid=grid,
            in_specs=[
                # Streamed per T-block (only per-step HBM traffic).
                pl.BlockSpec((t_block * B, H), lambda t: (t, 0)),
                # Grid-invariant operands (constant index map -> fetched once).
                # TODO(synk): at large H add pipeline_mode=pl.Buffered(1) to the
                # invariant specs below to halve their VMEM footprint.
                pl.BlockSpec((H, 4 * H), lambda t: (0, 0)),   # W_ih^T
                pl.BlockSpec((1, 4 * H), lambda t: (0, 0)),   # b_ih + b_hh
                pl.BlockSpec((H, 4 * H), lambda t: (0, 0)),   # W_hh^T
                pl.BlockSpec((H, H), lambda t: (0, 0)),       # W_fuse^T
                pl.BlockSpec((1, H), lambda t: (0, 0)),       # b_fuse
                pl.BlockSpec((B, H), lambda t: (0, 0)),       # tag_emb
            ],
            out_specs=pl.BlockSpec((B, H), lambda t: (0, 0)),
            scratch_shapes=[
                pltpu.VMEM((t_block * B, 4 * H), jnp.float32),  # gates_x block
                pltpu.VMEM((B, H), jnp.float32),                # h (persists)
                pltpu.VMEM((B, H), jnp.float32),                # c (persists)
            ],
        ),
        compiler_params=pltpu.CompilerParams(
            dimension_semantics=("arbitrary",),   # T axis is a recurrence
            vmem_limit_bytes=_VMEM_LIMIT_BYTES,
        ),
    )(x_2d, w_ih_T, b_gates, w_hh_T, w_fuse_T, b_fuse, tag_emb)
    return out


def _reference_forward(defn, pos, tag, params):
    """Pure-JAX f32 reference of the same forward (for a sanity check)."""
    del pos  # has no effect on the output (h0 never passed to the encoder)
    B, T = defn.shape
    H = params["embed_word"].shape[1]
    x = jnp.take(params["embed_word"], defn, axis=0)           # (B, T, H)
    tag_emb = jnp.take(params["embed_tag"], tag, axis=0)       # (B, H)
    w_ih, w_hh = params["w_ih"], params["w_hh"]
    b = params["b_ih"] + params["b_hh"]
    h = jnp.zeros((B, H), jnp.float32)
    c = jnp.zeros((B, H), jnp.float32)
    for t in range(T):
        gates = x[:, t, :] @ w_ih.T + h @ w_hh.T + b
        i = jax.nn.sigmoid(gates[:, 0:H])
        f = jax.nn.sigmoid(gates[:, H:2 * H])
        g = jnp.tanh(gates[:, 2 * H:3 * H])
        o = jax.nn.sigmoid(gates[:, 3 * H:4 * H])
        c = f * c + i * g
        h = o * jnp.tanh(c)
    return h @ params["w_fuse"].T + params["b_fuse"] + tag_emb


def init_params(key, vocab_size, pos_size, tag_size, hidden_size):
    """Deterministic synthetic parameter init (mirrors module shapes)."""
    ks = jax.random.split(key, 8)
    H = hidden_size
    s = 1.0 / jnp.sqrt(H)
    return {
        # nn.Embedding(vocab_size, H) inside EncoderRNN
        "embed_word": jax.random.normal(ks[0], (vocab_size, H), jnp.float32),
        # self.embed_pos / self.embed_tag : normal(mean=0, std=0.5)
        "embed_pos": 0.5 * jax.random.normal(ks[1], (pos_size, H), jnp.float32),
        "embed_tag": 0.5 * jax.random.normal(ks[2], (tag_size, H), jnp.float32),
        # nn.LSTM(H, H, num_layers=1): gate order (i, f, g, o)
        "w_ih": jax.random.uniform(ks[3], (4 * H, H), jnp.float32, -s, s),
        "w_hh": jax.random.uniform(ks[4], (4 * H, H), jnp.float32, -s, s),
        "b_ih": jax.random.uniform(ks[5], (4 * H,), jnp.float32, -s, s),
        "b_hh": jax.random.uniform(ks[6], (4 * H,), jnp.float32, -s, s),
        # fuse_hiddens: Linear(H * n_layers, H) with n_layers=1
        "w_fuse": jax.random.uniform(ks[7], (H, H), jnp.float32, -s, s),
        "b_fuse": jnp.zeros((H,), jnp.float32),
    }


if __name__ == "__main__":
    # Small, TPU-friendly shapes.
    B, T, H = 8, 8, 128
    vocab_size, pos_size, tag_size = 64, 16, 16

    key = jax.random.PRNGKey(0)
    k_param, k_defn, k_pos, k_tag = jax.random.split(key, 4)

    params = init_params(k_param, vocab_size, pos_size, tag_size, H)

    defn = jax.random.randint(k_defn, (B, T), 0, vocab_size, dtype=jnp.int32)
    defn_lengths = jnp.full((B,), T, dtype=jnp.int32)
    pos = jax.random.randint(k_pos, (B,), 0, pos_size, dtype=jnp.int32)
    tag = jax.random.randint(k_tag, (B,), 0, tag_size, dtype=jnp.int32)

    out = dict_encoder_forward(defn, defn_lengths, pos, tag, params)
    out = jax.block_until_ready(out)
    assert out.shape == (B, H) and out.dtype == jnp.float32

    # Loose-tolerance sanity check vs an f32 pure-JAX reference (bf16 MXU
    # operands in the kernel introduce a small, bounded drift).
    ref = jax.block_until_ready(_reference_forward(defn, pos, tag, params))
    max_err = float(jnp.max(jnp.abs(out - ref)))
    assert max_err < 1e-1, f"max abs error vs reference too large: {max_err}"

    print("KERNEL_OK")
</pallas_src>

<mosaic_0001>
module attributes {stable_mosaic.version = 11 : i64} {
  func.func @_dict_encoder_kernel(%arg0: i32, %arg1: memref<64x128xbf16, #tpu.memory_space<vmem>>, %arg2: memref<128x512xbf16, #tpu.memory_space<vmem>>, %arg3: memref<1x512xf32, #tpu.memory_space<vmem>>, %arg4: memref<128x512xbf16, #tpu.memory_space<vmem>>, %arg5: memref<128x128xbf16, #tpu.memory_space<vmem>>, %arg6: memref<1x128xf32, #tpu.memory_space<vmem>>, %arg7: memref<8x128xf32, #tpu.memory_space<vmem>>, %arg8: memref<8x128xf32, #tpu.memory_space<vmem>>, %arg9: memref<64x512xf32, #tpu.memory_space<vmem>>, %arg10: memref<8x128xf32, #tpu.memory_space<vmem>>, %arg11: memref<8x128xf32, #tpu.memory_space<vmem>>) attributes {dimension_semantics = [#tpu.dimension_semantics<arbitrary>], iteration_bounds = array<i64: 1>, scalar_prefetch = 0 : i64, scratch_operands = 3 : i64, tpu.core_type = #tpu.core_type<tc>, window_params = [{transform_indices = @transform_0, window_bounds = array<i64: 64, 128>}, {pipeline_mode = #tpu.pipeline_mode<synchronous>, transform_indices = @transform_1, window_bounds = array<i64: 128, 512>}, {pipeline_mode = #tpu.pipeline_mode<synchronous>, transform_indices = @transform_2, window_bounds = array<i64: 1, 512>}, {pipeline_mode = #tpu.pipeline_mode<synchronous>, transform_indices = @transform_3, window_bounds = array<i64: 128, 512>}, {pipeline_mode = #tpu.pipeline_mode<synchronous>, transform_indices = @transform_4, window_bounds = array<i64: 128, 128>}, {pipeline_mode = #tpu.pipeline_mode<synchronous>, transform_indices = @transform_5, window_bounds = array<i64: 1, 128>}, {pipeline_mode = #tpu.pipeline_mode<synchronous>, transform_indices = @transform_6, window_bounds = array<i64: 8, 128>}, {pipeline_mode = #tpu.pipeline_mode<synchronous>, transform_indices = @transform_7, window_bounds = array<i64: 8, 128>}]} {
    %c0_i32 = arith.constant 0 : i32
    %0 = arith.cmpi eq, %arg0, %c0_i32 : i32
    %1 = arith.extui %0 : i1 to i32
    %c0_i32_0 = arith.constant 0 : i32
    %2 = arith.cmpi ne, %1, %c0_i32_0 : i32
    scf.if %2 {
      %cst_83 = arith.constant 0.000000e+00 : f32
      %283 = vector.broadcast %cst_83 : f32 to vector<8x128xf32>
      %c0_84 = arith.constant 0 : index
      %c0_85 = arith.constant 0 : index
      %284 = vector.load %arg10[%c0_84, %c0_85] : memref<8x128xf32, #tpu.memory_space<vmem>>, vector<8x128xf32>
      tpu.vector_store %arg10[%c0_84, %c0_85], %283 {strides = array<i32>} : memref<8x128xf32, #tpu.memory_space<vmem>>, vector<8x128xf32>,
      %cst_86 = arith.constant 0.000000e+00 : f32
      %285 = vector.broadcast %cst_86 : f32 to vector<8x128xf32>
      %c0_87 = arith.constant 0 : index
      %c0_88 = arith.constant 0 : index
      %286 = vector.load %arg11[%c0_87, %c0_88] : memref<8x128xf32, #tpu.memory_space<vmem>>, vector<8x128xf32>
      tpu.vector_store %arg11[%c0_87, %c0_88], %285 {strides = array<i32>} : memref<8x128xf32, #tpu.memory_space<vmem>>, vector<8x128xf32>,
    } else {
    }
    %c0 = arith.constant 0 : index
    %c0_1 = arith.constant 0 : index
    %3 = vector.load %arg1[%c0, %c0_1] : memref<64x128xbf16, #tpu.memory_space<vmem>>, vector<64x128xbf16>
    %c0_2 = arith.constant 0 : index
    %c0_3 = arith.constant 0 : index
    %4 = vector.load %arg2[%c0_2, %c0_3] : memref<128x512xbf16, #tpu.memory_space<vmem>>, vector<128x512xbf16>
    %cst = arith.constant dense<0.000000e+00> : vector<64x512xf32>
    %5 = tpu.matmul %3, %4, %cst {dimension_numbers = #tpu.dot_dimension_numbers<[1], [0], [0], [1], [0, 0, 1, 1], [], []>} : vector<64x128xbf16>, vector<128x512xbf16>, vector<64x512xf32> -> vector<64x512xf32>
    %c0_4 = arith.constant 0 : index
    %c0_5 = arith.constant 0 : index
    %6 = vector.load %arg3[%c0_4, %c0_5] : memref<1x512xf32, #tpu.memory_space<vmem>>, vector<1x512xf32>
    %7 = vector.broadcast %6 : vector<1x512xf32> to vector<64x512xf32>
    %8 = arith.addf %5, %7 : vector<64x512xf32>
    %c0_6 = arith.constant 0 : index
    %c0_7 = arith.constant 0 : index
    %9 = vector.load %arg9[%c0_6, %c0_7] : memref<64x512xf32, #tpu.memory_space<vmem>>, vector<64x512xf32>
    tpu.vector_store %arg9[%c0_6, %c0_7], %8 {strides = array<i32>} : memref<64x512xf32, #tpu.memory_space<vmem>>, vector<64x512xf32>,
    %c0_8 = arith.constant 0 : index
    %c0_9 = arith.constant 0 : index
    %10 = vector.load %arg10[%c0_8, %c0_9] : memref<8x128xf32, #tpu.memory_space<vmem>>, vector<8x128xf32>
    %11 = arith.truncf %10 : vector<8x128xf32> to vector<8x128xbf16>
    %c0_10 = arith.constant 0 : index
    %c0_11 = arith.constant 0 : index
    %12 = vector.load %arg11[%c0_10, %c0_11] : memref<8x128xf32, #tpu.memory_space<vmem>>, vector<8x128xf32>
    %c0_i32_12 = arith.constant 0 : i32
    %c8_i32 = arith.constant 8 : i32
    %13 = arith.muli %c0_i32_12, %c8_i32 : i32
    %14 = tpu.assume_multiple %13, 8 : i32
    %15 = arith.index_cast %14 : i32 to index
    %c0_13 = arith.constant 0 : index
    %16 = vector.load %arg9[%15, %c0_13] : memref<64x512xf32, #tpu.memory_space<vmem>>, vector<8x512xf32>
    %c0_14 = arith.constant 0 : index
    %c0_15 = arith.constant 0 : index
    %17 = vector.load %arg4[%c0_14, %c0_15] : memref<128x512xbf16, #tpu.memory_space<vmem>>, vector<128x512xbf16>
    %cst_16 = arith.constant dense<0.000000e+00> : vector<8x512xf32>
    %18 = tpu.matmul %11, %17, %cst_16 {dimension_numbers = #tpu.dot_dimension_numbers<[1], [0], [0], [1], [0, 0, 1, 1], [], []>} : vector<8x128xbf16>, vector<128x512xbf16>, vector<8x512xf32> -> vector<8x512xf32>
    %19 = arith.addf %16, %18 : vector<8x512xf32>
    %20 = vector.extract_strided_slice %19 {offsets = [0, 0], sizes = [8, 128], strides = [1, 1]} : vector<8x512xf32> to vector<8x128xf32>
    %21 = arith.negf %20 : vector<8x128xf32>
    %22 = math.exp %21 : vector<8x128xf32>
    %cst_17 = arith.constant 1.000000e+00 : f32
    %23 = vector.broadcast %cst_17 : f32 to vector<8x128xf32>
    %24 = arith.addf %23, %22 : vector<8x128xf32>
    %25 = arith.divf %23, %24 : vector<8x128xf32>
    %26 = vector.extract_strided_slice %19 {offsets = [0, 128], sizes = [8, 128], strides = [1, 1]} : vector<8x512xf32> to vector<8x128xf32>
    %27 = arith.negf %26 : vector<8x128xf32>
    %28 = math.exp %27 : vector<8x128xf32>
    %cst_18 = arith.constant 1.000000e+00 : f32
    %29 = vector.broadcast %cst_18 : f32 to vector<8x128xf32>
    %30 = arith.addf %29, %28 : vector<8x128xf32>
    %31 = arith.divf %29, %30 : vector<8x128xf32>
    %32 = vector.extract_strided_slice %19 {offsets = [0, 256], sizes = [8, 128], strides = [1, 1]} : vector<8x512xf32> to vector<8x128xf32>
    %33 = math.tanh %32 : vector<8x128xf32>
    %34 = vector.extract_strided_slice %19 {offsets = [0, 384], sizes = [8, 128], strides = [1, 1]} : vector<8x512xf32> to vector<8x128xf32>
    %35 = arith.negf %34 : vector<8x128xf32>
    %36 = math.exp %35 : vector<8x128xf32>
    %cst_19 = arith.constant 1.000000e+00 : f32
    %37 = vector.broadcast %cst_19 : f32 to vector<8x128xf32>
    %38 = arith.addf %37, %36 : vector<8x128xf32>
    %39 = arith.divf %37, %38 : vector<8x128xf32>
    %40 = arith.mulf %31, %12 : vector<8x128xf32>
    %41 = arith.mulf %25, %33 : vector<8x128xf32>
    %42 = arith.addf %40, %41 : vector<8x128xf32>
    %43 = math.tanh %42 : vector<8x128xf32>
    %44 = arith.mulf %39, %43 : vector<8x128xf32>
    %45 = arith.truncf %44 : vector<8x128xf32> to vector<8x128xbf16>
    %c1_i32 = arith.constant 1 : i32
    %c8_i32_20 = arith.constant 8 : i32
    %46 = arith.muli %c1_i32, %c8_i32_20 : i32
    %47 = tpu.assume_multiple %46, 8 : i32
    %48 = arith.index_cast %47 : i32 to index
    %c0_21 = arith.constant 0 : index
    %49 = vector.load %arg9[%48, %c0_21] : memref<64x512xf32, #tpu.memory_space<vmem>>, vector<8x512xf32>
    %c0_22 = arith.constant 0 : index
    %c0_23 = arith.constant 0 : index
    %50 = vector.load %arg4[%c0_22, %c0_23] : memref<128x512xbf16, #tpu.memory_space<vmem>>, vector<128x512xbf16>
    %cst_24 = arith.constant dense<0.000000e+00> : vector<8x512xf32>
    %51 = tpu.matmul %45, %50, %cst_24 {dimension_numbers = #tpu.dot_dimension_numbers<[1], [0], [0], [1], [0, 0, 1, 1], [], []>} : vector<8x128xbf16>, vector<128x512xbf16>, vector<8x512xf32> -> vector<8x512xf32>
    %52 = arith.addf %49, %51 : vector<8x512xf32>
    %53 = vector.extract_strided_slice %52 {offsets = [0, 0], sizes = [8, 128], strides = [1, 1]} : vector<8x512xf32> to vector<8x128xf32>
    %54 = arith.negf %53 : vector<8x128xf32>
    %55 = math.exp %54 : vector<8x128xf32>
    %cst_25 = arith.constant 1.000000e+00 : f32
    %56 = vector.broadcast %cst_25 : f32 to vector<8x128xf32>
    %57 = arith.addf %56, %55 : vector<8x128xf32>
    %58 = arith.divf %56, %57 : vector<8x128xf32>
    %59 = vector.extract_strided_slice %52 {offsets = [0, 128], sizes = [8, 128], strides = [1, 1]} : vector<8x512xf32> to vector<8x128xf32>
    %60 = arith.negf %59 : vector<8x128xf32>
    %61 = math.exp %60 : vector<8x128xf32>
    %cst_26 = arith.constant 1.000000e+00 : f32
    %62 = vector.broadcast %cst_26 : f32 to vector<8x128xf32>
    %63 = arith.addf %62, %61 : vector<8x128xf32>
    %64 = arith.divf %62, %63 : vector<8x128xf32>
    %65 = vector.extract_strided_slice %52 {offsets = [0, 256], sizes = [8, 128], strides = [1, 1]} : vector<8x512xf32> to vector<8x128xf32>
    %66 = math.tanh %65 : vector<8x128xf32>
    %67 = vector.extract_strided_slice %52 {offsets = [0, 384], sizes = [8, 128], strides = [1, 1]} : vector<8x512xf32> to vector<8x128xf32>
    %68 = arith.negf %67 : vector<8x128xf32>
    %69 = math.exp %68 : vector<8x128xf32>
    %cst_27 = arith.constant 1.000000e+00 : f32
    %70 = vector.broadcast %cst_27 : f32 to vector<8x128xf32>
    %71 = arith.addf %70, %69 : vector<8x128xf32>
    %72 = arith.divf %70, %71 : vector<8x128xf32>
    %73 = arith.mulf %64, %42 : vector<8x128xf32>
    %74 = arith.mulf %58, %66 : vector<8x128xf32>
    %75 = arith.addf %73, %74 : vector<8x128xf32>
    %76 = math.tanh %75 : vector<8x128xf32>
    %77 = arith.mulf %72, %76 : vector<8x128xf32>
    %78 = arith.truncf %77 : vector<8x128xf32> to vector<8x128xbf16>
    %c2_i32 = arith.constant 2 : i32
    %c8_i32_28 = arith.constant 8 : i32
    %79 = arith.muli %c2_i32, %c8_i32_28 : i32
    %80 = tpu.assume_multiple %79, 8 : i32
    %81 = arith.index_cast %80 : i32 to index
    %c0_29 = arith.constant 0 : index
    %82 = vector.load %arg9[%81, %c0_29] : memref<64x512xf32, #tpu.memory_space<vmem>>, vector<8x512xf32>
    %c0_30 = arith.constant 0 : index
    %c0_31 = arith.constant 0 : index
    %83 = vector.load %arg4[%c0_30, %c0_31] : memref<128x512xbf16, #tpu.memory_space<vmem>>, vector<128x512xbf16>
    %cst_32 = arith.constant dense<0.000000e+00> : vector<8x512xf32>
    %84 = tpu.matmul %78, %83, %cst_32 {dimension_numbers = #tpu.dot_dimension_numbers<[1], [0], [0], [1], [0, 0, 1, 1], [], []>} : vector<8x128xbf16>, vector<128x512xbf16>, vector<8x512xf32> -> vector<8x512xf32>
    %85 = arith.addf %82, %84 : vector<8x512xf32>
    %86 = vector.extract_strided_slice %85 {offsets = [0, 0], sizes = [8, 128], strides = [1, 1]} : vector<8x512xf32> to vector<8x128xf32>
    %87 = arith.negf %86 : vector<8x128xf32>
    %88 = math.exp %87 : vector<8x128xf32>
    %cst_33 = arith.constant 1.000000e+00 : f32
    %89 = vector.broadcast %cst_33 : f32 to vector<8x128xf32>
    %90 = arith.addf %89, %88 : vector<8x128xf32>
    %91 = arith.divf %89, %90 : vector<8x128xf32>
    %92 = vector.extract_strided_slice %85 {offsets = [0, 128], sizes = [8, 128], strides = [1, 1]} : vector<8x512xf32> to vector<8x128xf32>
    %93 = arith.negf %92 : vector<8x128xf32>
    %94 = math.exp %93 : vector<8x128xf32>
    %cst_34 = arith.constant 1.000000e+00 : f32
    %95 = vector.broadcast %cst_34 : f32 to vector<8x128xf32>
    %96 = arith.addf %95, %94 : vector<8x128xf32>
    %97 = arith.divf %95, %96 : vector<8x128xf32>
    %98 = vector.extract_strided_slice %85 {offsets = [0, 256], sizes = [8, 128], strides = [1, 1]} : vector<8x512xf32> to vector<8x128xf32>
    %99 = math.tanh %98 : vector<8x128xf32>
    %100 = vector.extract_strided_slice %85 {offsets = [0, 384], sizes = [8, 128], strides = [1, 1]} : vector<8x512xf32> to vector<8x128xf32>
    %101 = arith.negf %100 : vector<8x128xf32>
    %102 = math.exp %101 : vector<8x128xf32>
    %cst_35 = arith.constant 1.000000e+00 : f32
    %103 = vector.broadcast %cst_35 : f32 to vector<8x128xf32>
    %104 = arith.addf %103, %102 : vector<8x128xf32>
    %105 = arith.divf %103, %104 : vector<8x128xf32>
    %106 = arith.mulf %97, %75 : vector<8x128xf32>
    %107 = arith.mulf %91, %99 : vector<8x128xf32>
    %108 = arith.addf %106, %107 : vector<8x128xf32>
    %109 = math.tanh %108 : vector<8x128xf32>
    %110 = arith.mulf %105, %109 : vector<8x128xf32>
    %111 = arith.truncf %110 : vector<8x128xf32> to vector<8x128xbf16>
    %c3_i32 = arith.constant 3 : i32
    %c8_i32_36 = arith.constant 8 : i32
    %112 = arith.muli %c3_i32, %c8_i32_36 : i32
    %113 = tpu.assume_multiple %112, 8 : i32
    %114 = arith.index_cast %113 : i32 to index
    %c0_37 = arith.constant 0 : index
    %115 = vector.load %arg9[%114, %c0_37] : memref<64x512xf32, #tpu.memory_space<vmem>>, vector<8x512xf32>
    %c0_38 = arith.constant 0 : index
    %c0_39 = arith.constant 0 : index
    %116 = vector.load %arg4[%c0_38, %c0_39] : memref<128x512xbf16, #tpu.memory_space<vmem>>, vector<128x512xbf16>
    %cst_40 = arith.constant dense<0.000000e+00> : vector<8x512xf32>
    %117 = tpu.matmul %111, %116, %cst_40 {dimension_numbers = #tpu.dot_dimension_numbers<[1], [0], [0], [1], [0, 0, 1, 1], [], []>} : vector<8x128xbf16>, vector<128x512xbf16>, vector<8x512xf32> -> vector<8x512xf32>
    %118 = arith.addf %115, %117 : vector<8x512xf32>
    %119 = vector.extract_strided_slice %118 {offsets = [0, 0], sizes = [8, 128], strides = [1, 1]} : vector<8x512xf32> to vector<8x128xf32>
    %120 = arith.negf %119 : vector<8x128xf32>
    %121 = math.exp %120 : vector<8x128xf32>
    %cst_41 = arith.constant 1.000000e+00 : f32
    %122 = vector.broadcast %cst_41 : f32 to vector<8x128xf32>
    %123 = arith.addf %122, %121 : vector<8x128xf32>
    %124 = arith.divf %122, %123 : vector<8x128xf32>
    %125 = vector.extract_strided_slice %118 {offsets = [0, 128], sizes = [8, 128], strides = [1, 1]} : vector<8x512xf32> to vector<8x128xf32>
    %126 = arith.negf %125 : vector<8x128xf32>
    %127 = math.exp %126 : vector<8x128xf32>
    %cst_42 = arith.constant 1.000000e+00 : f32
    %128 = vector.broadcast %cst_42 : f32 to vector<8x128xf32>
    %129 = arith.addf %128, %127 : vector<8x128xf32>
    %130 = arith.divf %128, %129 : vector<8x128xf32>
    %131 = vector.extract_strided_slice %118 {offsets = [0, 256], sizes = [8, 128], strides = [1, 1]} : vector<8x512xf32> to vector<8x128xf32>
    %132 = math.tanh %131 : vector<8x128xf32>
    %133 = vector.extract_strided_slice %118 {offsets = [0, 384], sizes = [8, 128], strides = [1, 1]} : vector<8x512xf32> to vector<8x128xf32>
    %134 = arith.negf %133 : vector<8x128xf32>
    %135 = math.exp %134 : vector<8x128xf32>
    %cst_43 = arith.constant 1.000000e+00 : f32
    %136 = vector.broadcast %cst_43 : f32 to vector<8x128xf32>
    %137 = arith.addf %136, %135 : vector<8x128xf32>
    %138 = arith.divf %136, %137 : vector<8x128xf32>
    %139 = arith.mulf %130, %108 : vector<8x128xf32>
    %140 = arith.mulf %124, %132 : vector<8x128xf32>
    %141 = arith.addf %139, %140 : vector<8x128xf32>
    %142 = math.tanh %141 : vector<8x128xf32>
    %143 = arith.mulf %138, %142 : vector<8x128xf32>
    %144 = arith.truncf %143 : vector<8x128xf32> to vector<8x128xbf16>
    %c4_i32 = arith.constant 4 : i32
    %c8_i32_44 = arith.constant 8 : i32
    %145 = arith.muli %c4_i32, %c8_i32_44 : i32
    %146 = tpu.assume_multiple %145, 8 : i32
    %147 = arith.index_cast %146 : i32 to index
    %c0_45 = arith.constant 0 : index
    %148 = vector.load %arg9[%147, %c0_45] : memref<64x512xf32, #tpu.memory_space<vmem>>, vector<8x512xf32>
    %c0_46 = arith.constant 0 : index
    %c0_47 = arith.constant 0 : index
    %149 = vector.load %arg4[%c0_46, %c0_47] : memref<128x512xbf16, #tpu.memory_space<vmem>>, vector<128x512xbf16>
    %cst_48 = arith.constant dense<0.000000e+00> : vector<8x512xf32>
    %150 = tpu.matmul %144, %149, %cst_48 {dimension_numbers = #tpu.dot_dimension_numbers<[1], [0], [0], [1], [0, 0, 1, 1], [], []>} : vector<8x128xbf16>, vector<128x512xbf16>, vector<8x512xf32> -> vector<8x512xf32>
    %151 = arith.addf %148, %150 : vector<8x512xf32>
    %152 = vector.extract_strided_slice %151 {offsets = [0, 0], sizes = [8, 128], strides = [1, 1]} : vector<8x512xf32> to vector<8x128xf32>
    %153 = arith.negf %152 : vector<8x128xf32>
    %154 = math.exp %153 : vector<8x128xf32>
    %cst_49 = arith.constant 1.000000e+00 : f32
    %155 = vector.broadcast %cst_49 : f32 to vector<8x128xf32>
    %156 = arith.addf %155, %154 : vector<8x128xf32>
    %157 = arith.divf %155, %156 : vector<8x128xf32>
    %158 = vector.extract_strided_slice %151 {offsets = [0, 128], sizes = [8, 128], strides = [1, 1]} : vector<8x512xf32> to vector<8x128xf32>
    %159 = arith.negf %158 : vector<8x128xf32>
    %160 = math.exp %159 : vector<8x128xf32>
    %cst_50 = arith.constant 1.000000e+00 : f32
    %161 = vector.broadcast %cst_50 : f32 to vector<8x128xf32>
    %162 = arith.addf %161, %160 : vector<8x128xf32>
    %163 = arith.divf %161, %162 : vector<8x128xf32>
    %164 = vector.extract_strided_slice %151 {offsets = [0, 256], sizes = [8, 128], strides = [1, 1]} : vector<8x512xf32> to vector<8x128xf32>
    %165 = math.tanh %164 : vector<8x128xf32>
    %166 = vector.extract_strided_slice %151 {offsets = [0, 384], sizes = [8, 128], strides = [1, 1]} : vector<8x512xf32> to vector<8x128xf32>
    %167 = arith.negf %166 : vector<8x128xf32>
    %168 = math.exp %167 : vector<8x128xf32>
    %cst_51 = arith.constant 1.000000e+00 : f32
    %169 = vector.broadcast %cst_51 : f32 to vector<8x128xf32>
    %170 = arith.addf %169, %168 : vector<8x128xf32>
    %171 = arith.divf %169, %170 : vector<8x128xf32>
    %172 = arith.mulf %163, %141 : vector<8x128xf32>
    %173 = arith.mulf %157, %165 : vector<8x128xf32>
    %174 = arith.addf %172, %173 : vector<8x128xf32>
    %175 = math.tanh %174 : vector<8x128xf32>
    %176 = arith.mulf %171, %175 : vector<8x128xf32>
    %177 = arith.truncf %176 : vector<8x128xf32> to vector<8x128xbf16>
    %c5_i32 = arith.constant 5 : i32
    %c8_i32_52 = arith.constant 8 : i32
    %178 = arith.muli %c5_i32, %c8_i32_52 : i32
    %179 = tpu.assume_multiple %178, 8 : i32
    %180 = arith.index_cast %179 : i32 to index
    %c0_53 = arith.constant 0 : index
    %181 = vector.load %arg9[%180, %c0_53] : memref<64x512xf32, #tpu.memory_space<vmem>>, vector<8x512xf32>
    %c0_54 = arith.constant 0 : index
    %c0_55 = arith.constant 0 : index
    %182 = vector.load %arg4[%c0_54, %c0_55] : memref<128x512xbf16, #tpu.memory_space<vmem>>, vector<128x512xbf16>
    %cst_56 = arith.constant dense<0.000000e+00> : vector<8x512xf32>
    %183 = tpu.matmul %177, %182, %cst_56 {dimension_numbers = #tpu.dot_dimension_numbers<[1], [0], [0], [1], [0, 0, 1, 1], [], []>} : vector<8x128xbf16>, vector<128x512xbf16>, vector<8x512xf32> -> vector<8x512xf32>
    %184 = arith.addf %181, %183 : vector<8x512xf32>
    %185 = vector.extract_strided_slice %184 {offsets = [0, 0], sizes = [8, 128], strides = [1, 1]} : vector<8x512xf32> to vector<8x128xf32>
    %186 = arith.negf %185 : vector<8x128xf32>
    %187 = math.exp %186 : vector<8x128xf32>
    %cst_57 = arith.constant 1.000000e+00 : f32
    %188 = vector.broadcast %cst_57 : f32 to vector<8x128xf32>
    %189 = arith.addf %188, %187 : vector<8x128xf32>
    %190 = arith.divf %188, %189 : vector<8x128xf32>
    %191 = vector.extract_strided_slice %184 {offsets = [0, 128], sizes = [8, 128], strides = [1, 1]} : vector<8x512xf32> to vector<8x128xf32>
    %192 = arith.negf %191 : vector<8x128xf32>
    %193 = math.exp %192 : vector<8x128xf32>
    %cst_58 = arith.constant 1.000000e+00 : f32
    %194 = vector.broadcast %cst_58 : f32 to vector<8x128xf32>
    %195 = arith.addf %194, %193 : vector<8x128xf32>
    %196 = arith.divf %194, %195 : vector<8x128xf32>
    %197 = vector.extract_strided_slice %184 {offsets = [0, 256], sizes = [8, 128], strides = [1, 1]} : vector<8x512xf32> to vector<8x128xf32>
    %198 = math.tanh %197 : vector<8x128xf32>
    %199 = vector.extract_strided_slice %184 {offsets = [0, 384], sizes = [8, 128], strides = [1, 1]} : vector<8x512xf32> to vector<8x128xf32>
    %200 = arith.negf %199 : vector<8x128xf32>
    %201 = math.exp %200 : vector<8x128xf32>
    %cst_59 = arith.constant 1.000000e+00 : f32
    %202 = vector.broadcast %cst_59 : f32 to vector<8x128xf32>
    %203 = arith.addf %202, %201 : vector<8x128xf32>
    %204 = arith.divf %202, %203 : vector<8x128xf32>
    %205 = arith.mulf %196, %174 : vector<8x128xf32>
    %206 = arith.mulf %190, %198 : vector<8x128xf32>
    %207 = arith.addf %205, %206 : vector<8x128xf32>
    %208 = math.tanh %207 : vector<8x128xf32>
    %209 = arith.mulf %204, %208 : vector<8x128xf32>
    %210 = arith.truncf %209 : vector<8x128xf32> to vector<8x128xbf16>
    %c6_i32 = arith.constant 6 : i32
    %c8_i32_60 = arith.constant 8 : i32
    %211 = arith.muli %c6_i32, %c8_i32_60 : i32
    %212 = tpu.assume_multiple %211, 8 : i32
    %213 = arith.index_cast %212 : i32 to index
    %c0_61 = arith.constant 0 : index
    %214 = vector.load %arg9[%213, %c0_61] : memref<64x512xf32, #tpu.memory_space<vmem>>, vector<8x512xf32>
    %c0_62 = arith.constant 0 : index
    %c0_63 = arith.constant 0 : index
    %215 = vector.load %arg4[%c0_62, %c0_63] : memref<128x512xbf16, #tpu.memory_space<vmem>>, vector<128x512xbf16>
    %cst_64 = arith.constant dense<0.000000e+00> : vector<8x512xf32>
    %216 = tpu.matmul %210, %215, %cst_64 {dimension_numbers = #tpu.dot_dimension_numbers<[1], [0], [0], [1], [0, 0, 1, 1], [], []>} : vector<8x128xbf16>, vector<128x512xbf16>, vector<8x512xf32> -> vector<8x512xf32>
    %217 = arith.addf %214, %216 : vector<8x512xf32>
    %218 = vector.extract_strided_slice %217 {offsets = [0, 0], sizes = [8, 128], strides = [1, 1]} : vector<8x512xf32> to vector<8x128xf32>
    %219 = arith.negf %218 : vector<8x128xf32>
    %220 = math.exp %219 : vector<8x128xf32>
    %cst_65 = arith.constant 1.000000e+00 : f32
    %221 = vector.broadcast %cst_65 : f32 to vector<8x128xf32>
    %222 = arith.addf %221, %220 : vector<8x128xf32>
    %223 = arith.divf %221, %222 : vector<8x128xf32>
    %224 = vector.extract_strided_slice %217 {offsets = [0, 128], sizes = [8, 128], strides = [1, 1]} : vector<8x512xf32> to vector<8x128xf32>
    %225 = arith.negf %224 : vector<8x128xf32>
    %226 = math.exp %225 : vector<8x128xf32>
    %cst_66 = arith.constant 1.000000e+00 : f32
    %227 = vector.broadcast %cst_66 : f32 to vector<8x128xf32>
    %228 = arith.addf %227, %226 : vector<8x128xf32>
    %229 = arith.divf %227, %228 : vector<8x128xf32>
    %230 = vector.extract_strided_slice %217 {offsets = [0, 256], sizes = [8, 128], strides = [1, 1]} : vector<8x512xf32> to vector<8x128xf32>
    %231 = math.tanh %230 : vector<8x128xf32>
    %232 = vector.extract_strided_slice %217 {offsets = [0, 384], sizes = [8, 128], strides = [1, 1]} : vector<8x512xf32> to vector<8x128xf32>
    %233 = arith.negf %232 : vector<8x128xf32>
    %234 = math.exp %233 : vector<8x128xf32>
    %cst_67 = arith.constant 1.000000e+00 : f32
    %235 = vector.broadcast %cst_67 : f32 to vector<8x128xf32>
    %236 = arith.addf %235, %234 : vector<8x128xf32>
    %237 = arith.divf %235, %236 : vector<8x128xf32>
    %238 = arith.mulf %229, %207 : vector<8x128xf32>
    %239 = arith.mulf %223, %231 : vector<8x128xf32>
    %240 = arith.addf %238, %239 : vector<8x128xf32>
    %241 = math.tanh %240 : vector<8x128xf32>
    %242 = arith.mulf %237, %241 : vector<8x128xf32>
    %243 = arith.truncf %242 : vector<8x128xf32> to vector<8x128xbf16>
    %c7_i32 = arith.constant 7 : i32
    %c8_i32_68 = arith.constant 8 : i32
    %244 = arith.muli %c7_i32, %c8_i32_68 : i32
    %245 = tpu.assume_multiple %244, 8 : i32
    %246 = arith.index_cast %245 : i32 to index
    %c0_69 = arith.constant 0 : index
    %247 = vector.load %arg9[%246, %c0_69] : memref<64x512xf32, #tpu.memory_space<vmem>>, vector<8x512xf32>
    %c0_70 = arith.constant 0 : index
    %c0_71 = arith.constant 0 : index
    %248 = vector.load %arg4[%c0_70, %c0_71] : memref<128x512xbf16, #tpu.memory_space<vmem>>, vector<128x512xbf16>
    %cst_72 = arith.constant dense<0.000000e+00> : vector<8x512xf32>
    %249 = tpu.matmul %243, %248, %cst_72 {dimension_numbers = #tpu.dot_dimension_numbers<[1], [0], [0], [1], [0, 0, 1, 1], [], []>} : vector<8x128xbf16>, vector<128x512xbf16>, vector<8x512xf32> -> vector<8x512xf32>
    %250 = arith.addf %247, %249 : vector<8x512xf32>
    %251 = vector.extract_strided_slice %250 {offsets = [0, 0], sizes = [8, 128], strides = [1, 1]} : vector<8x512xf32> to vector<8x128xf32>
    %252 = arith.negf %251 : vector<8x128xf32>
    %253 = math.exp %252 : vector<8x128xf32>
    %cst_73 = arith.constant 1.000000e+00 : f32
    %254 = vector.broadcast %cst_73 : f32 to vector<8x128xf32>
    %255 = arith.addf %254, %253 : vector<8x128xf32>
    %256 = arith.divf %254, %255 : vector<8x128xf32>
    %257 = vector.extract_strided_slice %250 {offsets = [0, 128], sizes = [8, 128], strides = [1, 1]} : vector<8x512xf32> to vector<8x128xf32>
    %258 = arith.negf %257 : vector<8x128xf32>
    %259 = math.exp %258 : vector<8x128xf32>
    %cst_74 = arith.constant 1.000000e+00 : f32
    %260 = vector.broadcast %cst_74 : f32 to vector<8x128xf32>
    %261 = arith.addf %260, %259 : vector<8x128xf32>
    %262 = arith.divf %260, %261 : vector<8x128xf32>
    %263 = vector.extract_strided_slice %250 {offsets = [0, 256], sizes = [8, 128], strides = [1, 1]} : vector<8x512xf32> to vector<8x128xf32>
    %264 = math.tanh %263 : vector<8x128xf32>
    %265 = vector.extract_strided_slice %250 {offsets = [0, 384], sizes = [8, 128], strides = [1, 1]} : vector<8x512xf32> to vector<8x128xf32>
    %266 = arith.negf %265 : vector<8x128xf32>
    %267 = math.exp %266 : vector<8x128xf32>
    %cst_75 = arith.constant 1.000000e+00 : f32
    %268 = vector.broadcast %cst_75 : f32 to vector<8x128xf32>
    %269 = arith.addf %268, %267 : vector<8x128xf32>
    %270 = arith.divf %268, %269 : vector<8x128xf32>
    %271 = arith.mulf %262, %240 : vector<8x128xf32>
    %272 = arith.mulf %256, %264 : vector<8x128xf32>
    %273 = arith.addf %271, %272 : vector<8x128xf32>
    %274 = math.tanh %273 : vector<8x128xf32>
    %275 = arith.mulf %270, %274 : vector<8x128xf32>
    %276 = arith.truncf %275 : vector<8x128xf32> to vector<8x128xbf16>
    %c8_i32_76 = arith.constant 8 : i32
    %277 = arith.extf %276 : vector<8x128xbf16> to vector<8x128xf32>
    %c0_77 = arith.constant 0 : index
    %c0_78 = arith.constant 0 : index
    %278 = vector.load %arg10[%c0_77, %c0_78] : memref<8x128xf32, #tpu.memory_space<vmem>>, vector<8x128xf32>
    tpu.vector_store %arg10[%c0_77, %c0_78], %277 {strides = array<i32>} : memref<8x128xf32, #tpu.memory_space<vmem>>, vector<8x128xf32>,
    %c0_79 = arith.constant 0 : index
    %c0_80 = arith.constant 0 : index
    %279 = vector.load %arg11[%c0_79, %c0_80] : memref<8x128xf32, #tpu.memory_space<vmem>>, vector<8x128xf32>
    tpu.vector_store %arg11[%c0_79, %c0_80], %273 {strides = array<i32>} : memref<8x128xf32, #tpu.memory_space<vmem>>, vector<8x128xf32>,
    %c0_i32_81 = arith.constant 0 : i32
    %280 = arith.cmpi eq, %arg0, %c0_i32_81 : i32
    %281 = arith.extui %280 : i1 to i32
    %c0_i32_82 = arith.constant 0 : i32
    %282 = arith.cmpi ne, %281, %c0_i32_82 : i32
    scf.if %282 {
      %c0_83 = arith.constant 0 : index
      %c0_84 = arith.constant 0 : index
      %283 = vector.load %arg5[%c0_83, %c0_84] : memref<128x128xbf16, #tpu.memory_space<vmem>>, vector<128x128xbf16>
      %cst_85 = arith.constant dense<0.000000e+00> : vector<8x128xf32>
      %284 = tpu.matmul %276, %283, %cst_85 {dimension_numbers = #tpu.dot_dimension_numbers<[1], [0], [0], [1], [0, 0, 1, 1], [], []>} : vector<8x128xbf16>, vector<128x128xbf16>, vector<8x128xf32> -> vector<8x128xf32>
      %c0_86 = arith.constant 0 : index
      %c0_87 = arith.constant 0 : index
      %285 = vector.load %arg6[%c0_86, %c0_87] : memref<1x128xf32, #tpu.memory_space<vmem>>, vector<1x128xf32>
      %286 = vector.broadcast %285 : vector<1x128xf32> to vector<8x128xf32>
      %287 = arith.addf %284, %286 : vector<8x128xf32>
      %c0_88 = arith.constant 0 : index
      %c0_89 = arith.constant 0 : index
      %288 = vector.load %arg7[%c0_88, %c0_89] : memref<8x128xf32, #tpu.memory_space<vmem>>, vector<8x128xf32>
      %289 = arith.addf %287, %288 : vector<8x128xf32>
      %c0_90 = arith.constant 0 : index
      %c0_91 = arith.constant 0 : index
      %290 = vector.load %arg8[%c0_90, %c0_91] : memref<8x128xf32, #tpu.memory_space<vmem>>, vector<8x128xf32>
      tpu.vector_store %arg8[%c0_90, %c0_91], %289 {strides = array<i32>} : memref<8x128xf32, #tpu.memory_space<vmem>>, vector<8x128xf32>,
    } else {
    }
    return
  }
  func.func @transform_0(%arg0: i32) -> (i32, i32) {
    %c0_i32 = arith.constant 0 : i32
    %c0_i32_0 = arith.constant 0 : i32
    return %arg0, %c0_i32 : i32, i32
  }
  func.func @transform_1(%arg0: i32) -> (i32, i32) {
    %c0_i32 = arith.constant 0 : i32
    %c0_i32_0 = arith.constant 0 : i32
    %c0_i32_1 = arith.constant 0 : i32
    return %c0_i32, %c0_i32_0 : i32, i32
  }
  func.func @transform_2(%arg0: i32) -> (i32, i32) {
    %c0_i32 = arith.constant 0 : i32
    %c0_i32_0 = arith.constant 0 : i32
    %c0_i32_1 = arith.constant 0 : i32
    return %c0_i32, %c0_i32_0 : i32, i32
  }
  func.func @transform_3(%arg0: i32) -> (i32, i32) {
    %c0_i32 = arith.constant 0 : i32
    %c0_i32_0 = arith.constant 0 : i32
    %c0_i32_1 = arith.constant 0 : i32
    return %c0_i32, %c0_i32_0 : i32, i32
  }
  func.func @transform_4(%arg0: i32) -> (i32, i32) {
    %c0_i32 = arith.constant 0 : i32
    %c0_i32_0 = arith.constant 0 : i32
    %c0_i32_1 = arith.constant 0 : i32
    return %c0_i32, %c0_i32_0 : i32, i32
  }
  func.func @transform_5(%arg0: i32) -> (i32, i32) {
    %c0_i32 = arith.constant 0 : i32
    %c0_i32_0 = arith.constant 0 : i32
    %c0_i32_1 = arith.constant 0 : i32
    return %c0_i32, %c0_i32_0 : i32, i32
  }
  func.func @transform_6(%arg0: i32) -> (i32, i32) {
    %c0_i32 = arith.constant 0 : i32
    %c0_i32_0 = arith.constant 0 : i32
    %c0_i32_1 = arith.constant 0 : i32
    return %c0_i32, %c0_i32_0 : i32, i32
  }
  func.func @transform_7(%arg0: i32) -> (i32, i32) {
    %c0_i32 = arith.constant 0 : i32
    %c0_i32_0 = arith.constant 0 : i32
    %c0_i32_1 = arith.constant 0 : i32
    return %c0_i32, %c0_i32_0 : i32, i32
  }
}

</mosaic_0001>

<bundles_post_ra>
// kernel: dict_encoder_forward.1
= control target key start
LH: loop header
LB: loop body
LE: loop exit
PB: predicated region body
PF: predicated region fallthrough
CT: control target
= control target key end

     0   :  { %v3077_v2 = vmov 0   ;;  %s3069_s0 = inlined_call_operand.vmem [shape: bf16[64,128], index: 0, kind: input, shape index: {}]   ;;  %s3070_s1 = inlined_call_operand.vmem [shape: bf16[128,512], index: 1, kind: input, shape index: {}]   ;;  %s3071_s2 = inlined_call_operand.vmem [shape: f32[1,512], index: 2, kind: input, shape index: {}]   ;;  %s3072_s3 = inlined_call_operand.vmem [shape: bf16[128,512], index: 3, kind: input, shape index: {}]   ;;  %s3073_s4 = inlined_call_operand.vmem [shape: bf16[128,128], index: 4, kind: input, shape index: {}]   ;;  %s3074_s5 = inlined_call_operand.vmem [shape: f32[1,128], index: 5, kind: input, shape index: {}]   ;;  %s3075_s6 = inlined_call_operand.vmem [shape: f32[8,128], index: 6, kind: input, shape index: {}]   ;;  %s3076_s7 = inlined_call_operand.hbm [shape: f32[8,128], index: 7, kind: output, shape index: {}]  }
   0x1   :  { %v1873_v0 = vld [vmem:[%s3070_s1 + $0xe4] ss:$16 sps:$4 sm:$0xff]   ;;  %v1875_v1 = vld [vmem:[%s3070_s1 + $0xec] ss:$16 sps:$4 sm:$0xff]   ;;  %312 = vmatprep.mubr.bf16.mxu0 %v3077_v2  ;;  %385 = vmatprep.mubr.bf16.mxu1 %v3077_v2  ;;  %v1877_v3 = vld [vmem:[%s3070_s1 + $0xe0] ss:$16 sps:$4 sm:$0xff]  }
   0x2   :  { %280 = vmatprep.subr.bf16.mxu0 %v1873_v0  ;;  %v1878_v4 = vld [vmem:[%s3070_s1 + $0xe8] ss:$16 sps:$4 sm:$0xff]   ;;  %353 = vmatprep.subr.bf16.mxu1 %v1875_v1  ;;  %v1879_v5 = vld [vmem:[%s3070_s1 + $0xc4] ss:$16 sps:$4 sm:$0xff]   ;;  %v1881_v6 = vld [vmem:[%s3070_s1 + $0xcc] ss:$16 sps:$4 sm:$0xff]  }
   0x3   :  { %281 = vmatpush1.bf16.msra.mxu0 %v1877_v3  ;;  %354 = vmatpush1.bf16.msra.mxu1 %v1878_v4  ;;  %v1883_v7 = vld [vmem:[%s3070_s1 + $0xc0] ss:$16 sps:$4 sm:$0xff]   ;;  %v1884_v8 = vld [vmem:[%s3070_s1 + $0xc8] ss:$16 sps:$4 sm:$0xff]   ;;  %v1885_v9 = vld [vmem:[%s3070_s1 + $0xa4] ss:$16 sps:$4 sm:$0xff]  }
   0x4   :  { %282 = vmatprep.subr.bf16.mxu0 %v1879_v5  ;;  %355 = vmatprep.subr.bf16.mxu1 %v1881_v6  ;;  %v1887_v10 = vld [vmem:[%s3070_s1 + $0xac] ss:$16 sps:$4 sm:$0xff]   ;;  %v1889_v11 = vld [vmem:[%s3070_s1 + $0xa0] ss:$16 sps:$4 sm:$0xff]   ;;  %v1890_v12 = vld [vmem:[%s3070_s1 + $0xa8] ss:$16 sps:$4 sm:$0xff]  }
   0x5   :  { %v1891_v13 = vld [vmem:[%s3070_s1 + $0x84] ss:$16 sps:$4 sm:$0xff]   ;;  %v1893_v14 = vld [vmem:[%s3070_s1 + $0x8c] ss:$16 sps:$4 sm:$0xff]   ;;  %v1895_v15 = vld [vmem:[%s3070_s1 + $0x80] ss:$16 sps:$4 sm:$0xff]  }
   0x6   :  { %v1896_v16 = vld [vmem:[%s3070_s1 + $0x88] ss:$16 sps:$4 sm:$0xff]   ;;  %v1897_v17 = vld [vmem:[%s3070_s1 + $0x64] ss:$16 sps:$4 sm:$0xff]   ;;  %v1899_v18 = vld [vmem:[%s3070_s1 + $0x6c] ss:$16 sps:$4 sm:$0xff]  }
   0x7   :  { %283 = vmatpush1.bf16.msra.mxu0 %v1883_v7  ;;  %356 = vmatpush1.bf16.msra.mxu1 %v1884_v8  ;;  %v1901_v19 = vld [vmem:[%s3070_s1 + $0x60] ss:$16 sps:$4 sm:$0xff]   ;;  %v1902_v20 = vld [vmem:[%s3070_s1 + $0x68] ss:$16 sps:$4 sm:$0xff]   ;;  %v1903_v21 = vld [vmem:[%s3070_s1 + $0x44] ss:$16 sps:$4 sm:$0xff]  }
   0x8   :  { %284 = vmatprep.subr.bf16.mxu0 %v1885_v9  ;;  %357 = vmatprep.subr.bf16.mxu1 %v1887_v10  ;;  %v1905_v22 = vld [vmem:[%s3070_s1 + $0x4c] ss:$16 sps:$4 sm:$0xff]   ;;  %v1907_v23 = vld [vmem:[%s3070_s1 + $0x40] ss:$16 sps:$4 sm:$0xff]   ;;  %v1908_v24 = vld [vmem:[%s3070_s1 + $0x48] ss:$16 sps:$4 sm:$0xff]  }
   0x9   :  { %v1909_v25 = vld [vmem:[%s3070_s1 + $0x24] ss:$16 sps:$4 sm:$0xff]   ;;  %v1911_v26 = vld [vmem:[%s3070_s1 + $0x2c] ss:$16 sps:$4 sm:$0xff]   ;;  %v1913_v27 = vld [vmem:[%s3070_s1 + $0x20] ss:$16 sps:$4 sm:$0xff]  }
   0xa   :  { %v1914_v28 = vld [vmem:[%s3070_s1 + $0x28] ss:$16 sps:$4 sm:$0xff]   ;;  %v1915_v29 = vld [vmem:[%s3070_s1 + $0x4] ss:$16 sps:$4 sm:$0xff]   ;;  %v1917_v30 = vld [vmem:[%s3070_s1 + $0xc] ss:$16 sps:$4 sm:$0xff]  }
   0xb   :  { %285 = vmatpush1.bf16.msra.mxu0 %v1889_v11  ;;  %358 = vmatpush1.bf16.msra.mxu1 %v1890_v12  ;;  %v1919_v31 = vld [vmem:[%s3070_s1] ss:$16 sps:$4 sm:$0xff]   ;;  %v1920_v32 = vld [vmem:[%s3070_s1 + $0x8] ss:$16 sps:$4 sm:$0xff]   ;;  %v2309_v33 = vld [vmem:[%s3072_s3 + $0xe4] ss:$16 sps:$4 sm:$0xff]  }
   0xc   :  { %286 = vmatprep.subr.bf16.mxu0 %v1891_v13  ;;  %359 = vmatprep.subr.bf16.mxu1 %v1893_v14  ;;  %v2314_v34 = vld [vmem:[%s3072_s3 + $0xec] ss:$16 sps:$4 sm:$0xff]   ;;  %v1921_v35 = vld [vmem:[%s3069_s0] sm:$0xff]   ;;  %v2327_v37 = vld [vmem:[%s3072_s3 + $0xe8] ss:$16 sps:$4 sm:$0xff]  }
   0xd   :  { %v2322_v36 = vld [vmem:[%s3072_s3 + $0xe0] ss:$16 sps:$4 sm:$0xff]   ;;  %v2334_v38 = vld [vmem:[%s3072_s3 + $0xc4] ss:$16 sps:$4 sm:$0xff]   ;;  %v2339_v39 = vld [vmem:[%s3072_s3 + $0xcc] ss:$16 sps:$4 sm:$0xff]  }
   0xe   :  { %v2344_v40 = vld [vmem:[%s3072_s3 + $0xc0] ss:$16 sps:$4 sm:$0xff]   ;;  %v2351_v41 = vld [vmem:[%s3072_s3 + $0xc8] ss:$16 sps:$4 sm:$0xff]   ;;  %v2358_v42 = vld [vmem:[%s3072_s3 + $0xa4] ss:$16 sps:$4 sm:$0xff]  }
   0xf   :  { %287 = vmatpush1.bf16.msra.mxu0 %v1895_v15  ;;  %360 = vmatpush1.bf16.msra.mxu1 %v1896_v16  ;;  %v2363_v43 = vld [vmem:[%s3072_s3 + $0xac] ss:$16 sps:$4 sm:$0xff]   ;;  %v2373_v45 = vld [vmem:[%s3072_s3 + $0xa0] ss:$16 sps:$4 sm:$0xff]   ;;  %v2378_v46 = vld [vmem:[%s3072_s3 + $0xa8] ss:$16 sps:$4 sm:$0xff]  }
  0x10   :  { %288 = vmatprep.subr.bf16.mxu0 %v1897_v17  ;;  %361 = vmatprep.subr.bf16.mxu1 %v1899_v18  ;;  %v1934_v44 = vld [vmem:[%s3069_s0 + $0x8] sm:$0xff]   ;;  %v2385_v47 = vld [vmem:[%s3072_s3 + $0x84] ss:$16 sps:$4 sm:$0xff]   ;;  %v2397_v49 = vld [vmem:[%s3072_s3 + $0x80] ss:$16 sps:$4 sm:$0xff]  }
  0x11   :  { %v2392_v48 = vld [vmem:[%s3072_s3 + $0x8c] ss:$16 sps:$4 sm:$0xff]   ;;  %v2402_v50 = vld [vmem:[%s3072_s3 + $0x88] ss:$16 sps:$4 sm:$0xff]   ;;  %v2409_v51 = vld [vmem:[%s3072_s3 + $0x64] ss:$16 sps:$4 sm:$0xff]  }
  0x12   :  { %v2416_v52 = vld [vmem:[%s3072_s3 + $0x6c] ss:$16 sps:$4 sm:$0xff]   ;;  %v1947_v53 = vld [vmem:[%s3069_s0 + $0x10] sm:$0xff]   ;;  %v2431_v55 = vld [vmem:[%s3072_s3 + $0x68] ss:$16 sps:$4 sm:$0xff]  }
  0x13   :  { %289 = vmatpush1.bf16.msra.mxu0 %v1901_v19  ;;  %362 = vmatpush1.bf16.msra.mxu1 %v1902_v20  ;;  %v2426_v54 = vld [vmem:[%s3072_s3 + $0x60] ss:$16 sps:$4 sm:$0xff]   ;;  %v2436_v56 = vld [vmem:[%s3072_s3 + $0x44] ss:$16 sps:$4 sm:$0xff]   ;;  %v2441_v57 = vld [vmem:[%s3072_s3 + $0x4c] ss:$16 sps:$4 sm:$0xff]  }
  0x14   :  { %290 = vmatprep.subr.bf16.mxu0 %v1903_v21  ;;  %363 = vmatprep.subr.bf16.mxu1 %v1905_v22  ;;  %v2450_v58 = vld [vmem:[%s3072_s3 + $0x40] ss:$16 sps:$4 sm:$0xff]   ;;  %v2457_v59 = vld [vmem:[%s3072_s3 + $0x48] ss:$16 sps:$4 sm:$0xff]  }
  0x17   :  { %291 = vmatpush1.bf16.msra.mxu0 %v1907_v23  ;;  %364 = vmatpush1.bf16.msra.mxu1 %v1908_v24 }
  0x18   :  { %292 = vmatprep.subr.bf16.mxu0 %v1909_v25  ;;  %365 = vmatprep.subr.bf16.mxu1 %v1911_v26 }
  0x1b   :  { %293 = vmatpush1.bf16.msra.mxu0 %v1913_v27  ;;  %366 = vmatpush1.bf16.msra.mxu1 %v1914_v28 }
  0x1c   :  { %294 = vmatprep.subr.bf16.mxu0 %v1915_v29  ;;  %367 = vmatprep.subr.bf16.mxu1 %v1917_v30 }
  0x1f   :  { %295 = vmatpush1.bf16.msra.mxu0 %v1919_v31  ;;  %368 = vmatpush1.bf16.msra.mxu1 %v1920_v32 }
  0x20   :  { %660 = vmatprep.subr.bf16.mxu0 %v2309_v33  ;;  %701 = vmatprep.subr.bf16.mxu1 %v2314_v34 }
  0x22   :  { %313 = vmatmul.mubr.bf16.vlgmr.msra.gmra.mxu0 %v1921_v35  ;;  %386 = vmatmul.mubr.bf16.vlgmr.msra.gmra.mxu1 %v1921_v35 }
  0x23   :  { %661 = vmatpush1.bf16.msra.mxu0 %v2322_v36  ;;  %702 = vmatpush1.bf16.msra.mxu1 %v2327_v37 }
  0x24   :  { %662 = vmatprep.subr.bf16.mxu0 %v2334_v38  ;;  %703 = vmatprep.subr.bf16.mxu1 %v2339_v39 }
  0x25   :  { %322 = vmatprep.mubr.bf16.mxu0 %v3077_v2  ;;  %395 = vmatprep.mubr.bf16.mxu1 %v3077_v2 }
  0x27   :  { %663 = vmatpush1.bf16.msra.mxu0 %v2344_v40  ;;  %704 = vmatpush1.bf16.msra.mxu1 %v2351_v41 }
  0x28   :  { %664 = vmatprep.subr.bf16.mxu0 %v2358_v42  ;;  %705 = vmatprep.subr.bf16.mxu1 %v2363_v43 }
  0x2a   :  { %323 = vmatmul.mubr.bf16.gmra.mxu0 %v1934_v44  ;;  %396 = vmatmul.mubr.bf16.gmra.mxu1 %v1934_v44 }
  0x2b   :  { %665 = vmatpush1.bf16.msra.mxu0 %v2373_v45  ;;  %706 = vmatpush1.bf16.msra.mxu1 %v2378_v46 }
  0x2c   :  { %666 = vmatprep.subr.bf16.mxu0 %v2385_v47  ;;  %707 = vmatprep.subr.bf16.mxu1 %v2392_v48 }
  0x2d   :  { %332 = vmatprep.mubr.bf16.mxu0 %v3077_v2  ;;  %405 = vmatprep.mubr.bf16.mxu1 %v3077_v2 }
  0x2f   :  { %667 = vmatpush1.bf16.msra.mxu0 %v2397_v49  ;;  %708 = vmatpush1.bf16.msra.mxu1 %v2402_v50 }
  0x30   :  { %668 = vmatprep.subr.bf16.mxu0 %v2409_v51  ;;  %709 = vmatprep.subr.bf16.mxu1 %v2416_v52 }
  0x32   :  { %333 = vmatmul.mubr.bf16.gmra.mxu0 %v1947_v53  ;;  %406 = vmatmul.mubr.bf16.gmra.mxu1 %v1947_v53 }
  0x33   :  { %669 = vmatpush1.bf16.msra.mxu0 %v2426_v54  ;;  %710 = vmatpush1.bf16.msra.mxu1 %v2431_v55 }
  0x34   :  { %12 = vsyncpa [#allocation6], 0  ;;  %670 = vmatprep.subr.bf16.mxu0 %v2436_v56  ;;  %711 = vmatprep.subr.bf16.mxu1 %v2441_v57  ;;  %v2464_v60 = vld [vmem:[%s3072_s3 + $0x24] ss:$16 sps:$4 sm:$0xff]   ;;  %v2469_v61 = vld [vmem:[%s3072_s3 + $0x2c] ss:$16 sps:$4 sm:$0xff]   ;;  %v76_v7 = vlaneseq }
  0x35   :  { %342 = vmatprep.mubr.bf16.mxu0 %v3077_v2  ;;  %415 = vmatprep.mubr.bf16.mxu1 %v3077_v2  ;;  %v1960_v62 = vld [vmem:[%s3069_s0 + $0x18] sm:$0xff]   ;;  %v2481_v63 = vld [vmem:[%s3072_s3 + $0x20] ss:$16 sps:$4 sm:$0xff]   ;;  %v2493_v1 = vld [vmem:[%s3072_s3 + $0x4] ss:$16 sps:$4 sm:$0xff]   ;;  %v2164_v6 = vmov 0.0|0.0  }
  0x36   :  { %v2486_v0 = vld [vmem:[%s3072_s3 + $0x28] ss:$16 sps:$4 sm:$0xff]   ;;  %v2498_v3 = vld [vmem:[%s3072_s3 + $0xc] ss:$16 sps:$4 sm:$0xff]   ;;  %v2505_v4 = vld [vmem:[%s3072_s3] ss:$16 sps:$4 sm:$0xff]  }
  0x37   :  { %671 = vmatpush1.bf16.msra.mxu0 %v2450_v58  ;;  %712 = vmatpush1.bf16.msra.mxu1 %v2457_v59  ;;  %v2510_v5 = vld [vmem:[%s3072_s3 + $0x8] ss:$16 sps:$4 sm:$0xff]   ;;  %v77_v8 = vshrl.u32 %v76_v7, 7  ;;  %v74_v12 = vld [vmem:[%s3071_s2] sm:$0xf]  ;;  %vm2166_vm0 = vmmov 0  }
  0x38   :  { %672 = vmatprep.subr.bf16.mxu0 %v2464_v60  ;;  %713 = vmatprep.subr.bf16.mxu1 %v2469_v61  ;;  %s2167_s23 = smov [#allocation5]  }
  0x39   :  { %v86_v9 = vsub.s32 2, %v77_v8  ;;  %v78_v10 = vsub.s32 0, %v77_v8  ;;  %v90_v11 = vsub.s32 3, %v77_v8  ;;  %v82_v16 = vsub.s32 1, %v77_v8  ;;  %s1723_s24 = sshll.u32 %s2167_s23, 4  ;;  %s1724_s24 = int_to_ptr.vmem [resolvable:$true] %s1723_s24 }
  0x3a   :  { %343 = vmatmul.mubr.bf16.gmra.mxu0 %v1960_v62  ;;  %416 = vmatmul.mubr.bf16.gmra.mxu1 %v1960_v62  ;;  %s2141_s25 = scalar_lea.vmem %s1724_s24, 128  ;;  %p2146_p1 = scmp.lt.s32.totalorder %s1724_s24, %s1724_s24 }
  0x3b   :  { %673 = vmatpush1.bf16.msra.mxu0 %v2481_v63  ;;  %714 = vmatpush1.bf16.msra.mxu1 %v2486_v0  ;;  %v2561_v15 = vrot.slane %v74_v12, %v86_v9  ;;  %v79_v19 = vrot.slane %v74_v12, %v78_v10  ;;  %v2567_v20 = vrot.slane %v74_v12, %v90_v11  ;;  %p2142_p0 = scmp.ne.s32.totalorder %s1724_s24, %s2141_s25  ;;  %p2147_p2 = scmp.lt.s32.totalorder %s2141_s25, %s2141_s25 }
  0x3c   :  { %674 = vmatprep.subr.bf16.mxu0 %v2493_v1  ;;  %715 = vmatprep.subr.bf16.mxu1 %v2498_v3  ;;  %v83_v23 = vrot.slane %v74_v12, %v82_v16 }
  0x3d   :  { %692 = vmatprep.mubr.bf16.mxu0 %v3077_v2  ;;  %733 = vmatprep.mubr.bf16.mxu1 %v3077_v2  ;;  %p2148_p3 = por %p2147_p2, %p2146_p1 }
  0x3f   :  { %675 = vmatpush1.bf16.msra.mxu0 %v2505_v4  ;;  %716 = vmatpush1.bf16.msra.mxu1 %v2510_v5  ;;  %p2149_p4 = pnand %p2148_p3, %p2142_p0 }
  0x40   :  { %778 = vmatprep.subr.bf16.mxu0 %v2309_v33  ;;  %819 = vmatprep.subr.bf16.mxu1 %v2314_v34 }
  0x42   :  { %693 = vmatmul.mubr.bf16.vlgmr.msra.gmra.mxu0 %v2164_v6  ;;  %734 = vmatmul.mubr.bf16.vlgmr.msra.gmra.mxu1 %v2164_v6 }
  0x43   :  { %779 = vmatpush1.bf16.msra.mxu0 %v2322_v36  ;;  %820 = vmatpush1.bf16.msra.mxu1 %v2327_v37 }
  0x44   :  { %780 = vmatprep.subr.bf16.mxu0 %v2334_v38  ;;  %821 = vmatprep.subr.bf16.mxu1 %v2339_v39 }
  0x45   :  { %810 = vmatprep.mubr.bf16.mxu0 %v3077_v2  ;;  %851 = vmatprep.mubr.bf16.mxu1 %v3077_v2 }
  0x47   :  { %781 = vmatpush1.bf16.msra.mxu0 %v2344_v40  ;;  %822 = vmatpush1.bf16.msra.mxu1 %v2351_v41 }
  0x48   :  { %782 = vmatprep.subr.bf16.mxu0 %v2358_v42  ;;  %823 = vmatprep.subr.bf16.mxu1 %v2363_v43 }
  0x4b   :  { %783 = vmatpush1.bf16.msra.mxu0 %v2373_v45  ;;  %824 = vmatpush1.bf16.msra.mxu1 %v2378_v46 }
  0x4c   :  { %784 = vmatprep.subr.bf16.mxu0 %v2385_v47  ;;  %825 = vmatprep.subr.bf16.mxu1 %v2392_v48 }
  0x4f   :  { %785 = vmatpush1.bf16.msra.mxu0 %v2397_v49  ;;  %826 = vmatpush1.bf16.msra.mxu1 %v2402_v50 }
  0x50   :  { %786 = vmatprep.subr.bf16.mxu0 %v2409_v51  ;;  %827 = vmatprep.subr.bf16.mxu1 %v2416_v52 }
  0x53   :  { %787 = vmatpush1.bf16.msra.mxu0 %v2426_v54  ;;  %828 = vmatpush1.bf16.msra.mxu1 %v2431_v55 }
  0x54   :  { %788 = vmatprep.subr.bf16.mxu0 %v2436_v56  ;;  %829 = vmatprep.subr.bf16.mxu1 %v2441_v57 }
  0x57   :  { %789 = vmatpush1.bf16.msra.mxu0 %v2450_v58  ;;  %830 = vmatpush1.bf16.msra.mxu1 %v2457_v59 }
  0x58   :  { %790 = vmatprep.subr.bf16.mxu0 %v2464_v60  ;;  %831 = vmatprep.subr.bf16.mxu1 %v2469_v61 }
  0x5b   :  { %791 = vmatpush1.bf16.msra.mxu0 %v2481_v63  ;;  %832 = vmatpush1.bf16.msra.mxu1 %v2486_v0 }
  0x5c   :  { %792 = vmatprep.subr.bf16.mxu0 %v2493_v1  ;;  %833 = vmatprep.subr.bf16.mxu1 %v2498_v3 }
  0x5f   :  { %793 = vmatpush1.bf16.msra.mxu0 %v2505_v4  ;;  %834 = vmatpush1.bf16.msra.mxu1 %v2510_v5 }
  0x60   :  { %896 = vmatprep.subr.bf16.mxu0 %v2309_v33  ;;  %937 = vmatprep.subr.bf16.mxu1 %v2314_v34 }
  0xe2   :  { %v2557_v13 = vpop.f32.mrf.mxu0  ;;  %v2559_v14 = vpop.f32.mrf.mxu1 }
  0xe4   :  { %v2563_v17 = vpop.f32.mrf.mxu0  ;;  %v2565_v18 = vpop.f32.mrf.mxu1 }
  0xe6   :  { %v318_v21 = vpop.f32.mrf.mxu0  ;;  %v391_v22 = vpop.f32.mrf.mxu1 }
  0xe7   :  { %v2569_v24 = vadd.f32 %v318_v21, %v79_v19  ;;  %v2572_v25 = vadd.f32 %v391_v22, %v2561_v15 }
  0xe8   :  { %v320_v26 = vpop.f32.mrf.mxu0  ;;  %v393_v27 = vpop.f32.mrf.mxu1 }
  0xe9   :  { %v2574_v28 = vadd.f32 %v320_v26, %v83_v23  ;;  %v2577_v29 = vadd.f32 %v393_v27, %v2567_v20 }
  0xea   :  { %v324_v30 = vpop.f32.mrf.mxu0  ;;  %v397_v31 = vpop.f32.mrf.mxu1 }
  0xeb   :  { %v2579_v32 = vadd.f32 %v324_v30, %v79_v19  ;;  %v2582_v35 = vadd.f32 %v397_v31, %v2561_v15 }
  0xec   :  { %v326_v44 = vpop.f32.mrf.mxu0  ;;  %v399_v53 = vpop.f32.mrf.mxu1 }
  0xed   :  { %3079 = vst [vmem:[#allocation8_spill] sm:$0xff] %v2582_v35  ;;  %v2584_v62 = vadd.f32 %v326_v44, %v83_v23  ;;  %v2587_v6 = vadd.f32 %v399_v53, %v2567_v20 }
  0xee   :  { %v328_v7 = vpop.f32.mrf.mxu0  ;;  %v401_v8 = vpop.f32.mrf.mxu1 }
  0xef   :  { %v2589_v9 = vadd.f32 %v328_v7, %v79_v19  ;;  %v2592_v10 = vadd.f32 %v401_v8, %v2561_v15 }
  0xf0   :  { %v330_v11 = vpop.f32.mrf.mxu0  ;;  %v403_v12 = vpop.f32.mrf.mxu1 }
  0xf1   :  { %3080 = vst [vmem:[#allocation9_spill] sm:$0xff] %v2589_v9  ;;  %3081 = vst [vmem:[#allocation10_spill] sm:$0xff] %v2592_v10  ;;  %v2594_v16 = vadd.f32 %v330_v11, %v83_v23  ;;  %v2597_v21 = vadd.f32 %v403_v12, %v2567_v20 }
  0xf2   :  { %v334_v22 = vpop.f32.mrf.mxu0  ;;  %v407_v26 = vpop.f32.mrf.mxu1 }
  0xf3   :  { %3082 = vst [vmem:[#allocation11_spill] sm:$0xff] %v2594_v16  ;;  %3083 = vst [vmem:[#allocation12_spill] sm:$0xff] %v2597_v21  ;;  %v2599_v27 = vadd.f32 %v334_v22, %v79_v19  ;;  %v2602_v30 = vadd.f32 %v407_v26, %v2561_v15 }
  0xf4   :  { %v336_v31 = vpop.f32.mrf.mxu0  ;;  %v409_v44 = vpop.f32.mrf.mxu1 }
  0xf5   :  { %3084 = vst [vmem:[#allocation13_spill] sm:$0xff] %v2599_v27  ;;  %3085 = vst [vmem:[#allocation14_spill] sm:$0xff] %v2602_v30  ;;  %v2604_v53 = vadd.f32 %v336_v31, %v83_v23  ;;  %v2607_v7 = vadd.f32 %v409_v44, %v2567_v20 }
  0xf6   :  { %v338_v8 = vpop.f32.mrf.mxu0  ;;  %v411_v11 = vpop.f32.mrf.mxu1 }
  0xf7   :  { %3086 = vst [vmem:[#allocation15_spill] sm:$0xff] %v2604_v53  ;;  %3087 = vst [vmem:[#allocation16_spill] sm:$0xff] %v2607_v7  ;;  %v2609_v2 = vadd.f32 %v338_v8, %v79_v19  ;;  %v2612_v12 = vadd.f32 %v411_v11, %v2561_v15 }
  0xf8   :  { %v340_v10 = vpop.f32.mrf.mxu0  ;;  %v413_v22 = vpop.f32.mrf.mxu1 }
  0xf9   :  { %3088 = vst [vmem:[#allocation17_spill] sm:$0xff] %v2609_v2  ;;  %3089 = vst [vmem:[#allocation18_spill] sm:$0xff] %v2612_v12  ;;  %v2614_v27 = vadd.f32 %v340_v10, %v83_v23  ;;  %v2617_v26 = vadd.f32 %v413_v22, %v2567_v20 }
  0xfa   :  { %v344_v30 = vpop.f32.mrf.mxu0  ;;  %v417_v31 = vpop.f32.mrf.mxu1 }
  0xfb   :  { %3090 = vst [vmem:[#allocation19_spill] sm:$0xff] %v2614_v27  ;;  %3091 = vst [vmem:[#allocation20_spill] sm:$0xff] %v2617_v26  ;;  %v2619_v53 = vadd.f32 %v344_v30, %v79_v19  ;;  %v2622_v44 = vadd.f32 %v417_v31, %v2561_v15 }
  0xfc   :  { %v346_v7 = vpop.f32.mrf.mxu0  ;;  %v419_v8 = vpop.f32.mrf.mxu1 }
  0xfd   :  { %3092 = vst [vmem:[#allocation21_spill] sm:$0xff] %v2619_v53  ;;  %3093 = vst [vmem:[#allocation22_spill] sm:$0xff] %v2622_v44  ;;  %v2624_v2 = vadd.f32 %v346_v7, %v83_v23  ;;  %v2627_v11 = vadd.f32 %v419_v8, %v2567_v20  ;;  %v315_v53 = vadd.f32 %v2557_v13, %v79_v19 }
  0xfe   :  { %v348_v12 = vpop.f32.mrf.mxu0  ;;  %v421_v10 = vpop.f32.mrf.mxu1  ;;  %v317_v8 = vadd.f32 %v2563_v17, %v83_v23 }
  0xff   :  { %3094 = vst [vmem:[#allocation23_spill] sm:$0xff] %v2624_v2  ;;  %3095 = vst [vmem:[#allocation24_spill] sm:$0xff] %v2627_v11  ;;  %v2629_v27 = vadd.f32 %v348_v12, %v79_v19  ;;  %v2632_v22 = vadd.f32 %v421_v10, %v2561_v15  ;;  %v390_v19 = vadd.f32 %v2565_v18, %v2567_v20 }
 0x100   :  { %v350_v26 = vpop.f32.mrf.mxu0  ;;  %v423_v30 = vpop.f32.mrf.mxu1 }
 0x101   :  { %3096 = vst [vmem:[#allocation25_spill] sm:$0xff] %v2629_v27  ;;  %3097 = vst [vmem:[#allocation26_spill] sm:$0xff] %v2632_v22  ;;  %v2635_v31 = vadd.f32 %v350_v26, %v83_v23  ;;  %v2638_v44 = vadd.f32 %v423_v30, %v2567_v20  ;;  %v388_v30 = vadd.f32 %v2559_v14, %v2561_v15 }
 0x102   :  { %v694_v7 = vpop.f32.mrf.mxu0  ;;  %v735_v2 = vpop.f32.mrf.mxu1 }
 0x103   :  { %v742_v11 = vadd.f32 %v694_v7, %v315_v53  ;;  %v744_v53 = vadd.f32 %v735_v2, %v388_v30 }
 0x104   :  { %v696_v21 = vpop.f32.mrf.mxu0  ;;  %v737_v12 = vpop.f32.mrf.mxu1 }
 0x105   :  { %v1806_v27 = vmul.f32 -1.442695, %v742_v11  ;;  %v743_v16 = vadd.f32 %v696_v21, %v317_v8  ;;  %v745_v26 = vadd.f32 %v737_v12, %v390_v19 }
 0x106   :  { %v698_v10 = vpop.f32.mrf.mxu0  ;;  %v739_v22 = vpop.f32.mrf.mxu1 }
 0x107   :  { %1981 = vpow2.f32 %v1806_v27  ;;  %v1807_v9 = vmul.f32 -1.442695, %v743_v16  ;;  %v1808_v17 = vmul.f32 -1.442695, %v745_v26  ;;  %v3098_v10 = vmov 0  }
 0x108   :  { %v699_v35 = vpop.f32.mrf.mxu0  ;;  %v740_v13 = vpop.f32.mrf.mxu1 }
 0x109   :  { %1983 = vpow2.f32 %v1807_v9 }
 0x10a   :  { %1985 = vpow2.f32 %v1808_v17 }
 0x114   :  { %v1982_v23 = vpop.eup %1981 }
 0x115   :  { %v749_v7 = vadd.f32 1.0, %v1982_v23 }
 0x116   :  { %v1984_v11 = vpop.eup %1983 }
 0x117   :  { %1987 = vrcp.f32 %v749_v7  ;;  %v755_v21 = vadd.f32 1.0, %v1984_v11  ;;  %v1986_v35 = vpop.eup %1985 }
 0x118   :  { %1989 = vtanh.f32 %v744_v53  ;;  %v762_v22 = vadd.f32 1.0, %v1986_v35 }
 0x119   :  { %1991 = vrcp.f32 %v755_v21 }
 0x11a   :  { %1993 = vrcp.f32 %v762_v22 }
 0x124   :  { %v1988_v16 = vpop.eup %1987 }
 0x125   :  { %v1990_v9 = vpop.eup %1989 }
 0x126   :  { %v1992_v27 = vpop.eup %1991  ;;  %v766_v20 = vmul.f32 %v1990_v9, %v1988_v16 }
 0x127   :  { %v765_v18 = vmul.f32 0.0, %v1992_v27  ;;  %v1994_v2 = vpop.eup %1993 }
 0x129   :  { %v2645_v8 = vadd.f32 %v766_v20, %v765_v18 }
 0x12b   :  { %1995 = vtanh.f32 %v2645_v8 }
 0x138   :  { %v1996_v14 = vpop.eup %1995 }
 0x139   :  { %v769_v15 = vmul.f32 %v1996_v14, %v1994_v2 }
 0x13b   :  { %v770_v12 = vpack.c.bf16 %v769_v15, %v769_v15 }
 0x13d   :  { %811 = vmatmul.mubr.bf16.vlgmr.msra.gmra.mxu0 %v770_v12  ;;  %852 = vmatmul.mubr.bf16.vlgmr.msra.gmra.mxu1 %v770_v12 }
 0x13e   :  { %897 = vmatpush1.bf16.msra.mxu0 %v2322_v36  ;;  %938 = vmatpush1.bf16.msra.mxu1 %v2327_v37 }
 0x13f   :  { %898 = vmatprep.subr.bf16.mxu0 %v2334_v38  ;;  %939 = vmatprep.subr.bf16.mxu1 %v2339_v39 }
 0x140   :  { %928 = vmatprep.mubr.bf16.mxu0 %v3098_v10  ;;  %969 = vmatprep.mubr.bf16.mxu1 %v3098_v10 }
 0x142   :  { %899 = vmatpush1.bf16.msra.mxu0 %v2344_v40  ;;  %940 = vmatpush1.bf16.msra.mxu1 %v2351_v41 }
 0x143   :  { %900 = vmatprep.subr.bf16.mxu0 %v2358_v42  ;;  %941 = vmatprep.subr.bf16.mxu1 %v2363_v43 }
 0x146   :  { %901 = vmatpush1.bf16.msra.mxu0 %v2373_v45  ;;  %942 = vmatpush1.bf16.msra.mxu1 %v2378_v46 }
 0x147   :  { %902 = vmatprep.subr.bf16.mxu0 %v2385_v47  ;;  %943 = vmatprep.subr.bf16.mxu1 %v2392_v48 }
 0x14a   :  { %903 = vmatpush1.bf16.msra.mxu0 %v2397_v49  ;;  %944 = vmatpush1.bf16.msra.mxu1 %v2402_v50 }
 0x14b   :  { %904 = vmatprep.subr.bf16.mxu0 %v2409_v51  ;;  %945 = vmatprep.subr.bf16.mxu1 %v2416_v52 }
 0x14e   :  { %905 = vmatpush1.bf16.msra.mxu0 %v2426_v54  ;;  %946 = vmatpush1.bf16.msra.mxu1 %v2431_v55 }
 0x14f   :  { %906 = vmatprep.subr.bf16.mxu0 %v2436_v56  ;;  %947 = vmatprep.subr.bf16.mxu1 %v2441_v57 }
 0x152   :  { %907 = vmatpush1.bf16.msra.mxu0 %v2450_v58  ;;  %948 = vmatpush1.bf16.msra.mxu1 %v2457_v59 }
 0x153   :  { %908 = vmatprep.subr.bf16.mxu0 %v2464_v60  ;;  %949 = vmatprep.subr.bf16.mxu1 %v2469_v61 }
 0x156   :  { %909 = vmatpush1.bf16.msra.mxu0 %v2481_v63  ;;  %950 = vmatpush1.bf16.msra.mxu1 %v2486_v0 }
 0x157   :  { %910 = vmatprep.subr.bf16.mxu0 %v2493_v1  ;;  %951 = vmatprep.subr.bf16.mxu1 %v2498_v3 }
 0x15a   :  { %911 = vmatpush1.bf16.msra.mxu0 %v2505_v4  ;;  %952 = vmatpush1.bf16.msra.mxu1 %v2510_v5 }
 0x15b   :  { %1014 = vmatprep.subr.bf16.mxu0 %v2309_v33  ;;  %1055 = vmatprep.subr.bf16.mxu1 %v2314_v34 }
 0x1fd   :  { %v812_v13 = vpop.f32.mrf.mxu0  ;;  %v853_v19 = vpop.f32.mrf.mxu1 }
 0x1fe   :  { %v860_v26 = vadd.f32 %v812_v13, %v2569_v24  ;;  %v862_v27 = vadd.f32 %v853_v19, %v2572_v25 }
 0x1ff   :  { %v814_v30 = vpop.f32.mrf.mxu0  ;;  %v855_v17 = vpop.f32.mrf.mxu1 }
 0x200   :  { %v1809_v23 = vmul.f32 -1.442695, %v860_v26  ;;  %v861_v53 = vadd.f32 %v814_v30, %v2574_v28  ;;  %v863_v9 = vadd.f32 %v855_v17, %v2577_v29 }
 0x201   :  { %v816_v7 = vpop.f32.mrf.mxu0  ;;  %v857_v11 = vpop.f32.mrf.mxu1 }
 0x202   :  { %1997 = vpow2.f32 %v1809_v23  ;;  %v1810_v21 = vmul.f32 -1.442695, %v861_v53  ;;  %v1811_v22 = vmul.f32 -1.442695, %v863_v9 }
 0x203   :  { %v817_v35 = vpop.f32.mrf.mxu0  ;;  %v858_v16 = vpop.f32.mrf.mxu1 }
 0x204   :  { %1999 = vpow2.f32 %v1810_v21 }
 0x205   :  { %2001 = vtanh.f32 %v862_v27 }
 0x206   :  { %2003 = vpow2.f32 %v1811_v22 }
 0x20f   :  { %v1998_v18 = vpop.eup %1997 }
 0x210   :  { %v867_v20 = vadd.f32 1.0, %v1998_v18 }
 0x211   :  { %v2000_v24 = vpop.eup %1999 }
 0x212   :  { %2005 = vrcp.f32 %v867_v20  ;;  %v873_v2 = vadd.f32 1.0, %v2000_v24  ;;  %v2002_v28 = vpop.eup %2001 }
 0x213   :  { %v2004_v14 = vpop.eup %2003 }
 0x214   :  { %2007 = vrcp.f32 %v873_v2  ;;  %v880_v26 = vadd.f32 1.0, %v2004_v14  ;;  %v3099_v2 = vld [vmem:[#allocation8_spill] sm:$0xff] }
 0x216   :  { %2009 = vrcp.f32 %v880_v26 }
 0x21f   :  { %v2006_v15 = vpop.eup %2005 }
 0x220   :  { %v884_v12 = vmul.f32 %v2006_v15, %v2002_v28 }
 0x221   :  { %v2008_v13 = vpop.eup %2007 }
 0x222   :  { %v883_v30 = vmul.f32 %v2008_v13, %v2645_v8 }
 0x223   :  { %v2010_v25 = vpop.eup %2009 }
 0x224   :  { %v2687_v29 = vadd.f32 %v884_v12, %v883_v30 }
 0x226   :  { %2011 = vtanh.f32 %v2687_v29 }
 0x233   :  { %v2012_v19 = vpop.eup %2011 }
 0x234   :  { %v887_v17 = vmul.f32 %v2012_v19, %v2010_v25 }
 0x236   :  { %v888_v23 = vpack.c.bf16 %v887_v17, %v887_v17 }
 0x238   :  { %929 = vmatmul.mubr.bf16.vlgmr.msra.gmra.mxu0 %v888_v23  ;;  %970 = vmatmul.mubr.bf16.vlgmr.msra.gmra.mxu1 %v888_v23 }
 0x239   :  { %1015 = vmatpush1.bf16.msra.mxu0 %v2322_v36  ;;  %1056 = vmatpush1.bf16.msra.mxu1 %v2327_v37 }
 0x23a   :  { %1016 = vmatprep.subr.bf16.mxu0 %v2334_v38  ;;  %1057 = vmatprep.subr.bf16.mxu1 %v2339_v39 }
 0x23b   :  { %1046 = vmatprep.mubr.bf16.mxu0 %v3098_v10  ;;  %1087 = vmatprep.mubr.bf16.mxu1 %v3098_v10 }
 0x23d   :  { %1017 = vmatpush1.bf16.msra.mxu0 %v2344_v40  ;;  %1058 = vmatpush1.bf16.msra.mxu1 %v2351_v41 }
 0x23e   :  { %1018 = vmatprep.subr.bf16.mxu0 %v2358_v42  ;;  %1059 = vmatprep.subr.bf16.mxu1 %v2363_v43 }
 0x241   :  { %1019 = vmatpush1.bf16.msra.mxu0 %v2373_v45  ;;  %1060 = vmatpush1.bf16.msra.mxu1 %v2378_v46 }
 0x242   :  { %1020 = vmatprep.subr.bf16.mxu0 %v2385_v47  ;;  %1061 = vmatprep.subr.bf16.mxu1 %v2392_v48 }
 0x245   :  { %1021 = vmatpush1.bf16.msra.mxu0 %v2397_v49  ;;  %1062 = vmatpush1.bf16.msra.mxu1 %v2402_v50 }
 0x246   :  { %1022 = vmatprep.subr.bf16.mxu0 %v2409_v51  ;;  %1063 = vmatprep.subr.bf16.mxu1 %v2416_v52 }
 0x249   :  { %1023 = vmatpush1.bf16.msra.mxu0 %v2426_v54  ;;  %1064 = vmatpush1.bf16.msra.mxu1 %v2431_v55 }
 0x24a   :  { %1024 = vmatprep.subr.bf16.mxu0 %v2436_v56  ;;  %1065 = vmatprep.subr.bf16.mxu1 %v2441_v57 }
 0x24d   :  { %1025 = vmatpush1.bf16.msra.mxu0 %v2450_v58  ;;  %1066 = vmatpush1.bf16.msra.mxu1 %v2457_v59 }
 0x24e   :  { %1026 = vmatprep.subr.bf16.mxu0 %v2464_v60  ;;  %1067 = vmatprep.subr.bf16.mxu1 %v2469_v61 }
 0x251   :  { %1027 = vmatpush1.bf16.msra.mxu0 %v2481_v63  ;;  %1068 = vmatpush1.bf16.msra.mxu1 %v2486_v0 }
 0x252   :  { %1028 = vmatprep.subr.bf16.mxu0 %v2493_v1  ;;  %1069 = vmatprep.subr.bf16.mxu1 %v2498_v3 }
 0x255   :  { %1029 = vmatpush1.bf16.msra.mxu0 %v2505_v4  ;;  %1070 = vmatpush1.bf16.msra.mxu1 %v2510_v5 }
 0x256   :  { %1132 = vmatprep.subr.bf16.mxu0 %v2309_v33  ;;  %1173 = vmatprep.subr.bf16.mxu1 %v2314_v34 }
 0x2f8   :  { %v930_v8 = vpop.f32.mrf.mxu0  ;;  %v971_v53 = vpop.f32.mrf.mxu1 }
 0x2f9   :  { %v978_v7 = vadd.f32 %v930_v8, %v2579_v32  ;;  %v980_v28 = vadd.f32 %v971_v53, %v3099_v2 }
 0x2fa   :  { %v932_v11 = vpop.f32.mrf.mxu0  ;;  %v973_v21 = vpop.f32.mrf.mxu1 }
 0x2fb   :  { %v1812_v35 = vmul.f32 -1.442695, %v978_v7  ;;  %v979_v16 = vadd.f32 %v932_v11, %v2584_v62  ;;  %v981_v24 = vadd.f32 %v973_v21, %v2587_v6 }
 0x2fc   :  { %v934_v9 = vpop.f32.mrf.mxu0  ;;  %v975_v27 = vpop.f32.mrf.mxu1 }
 0x2fd   :  { %2013 = vpow2.f32 %v1812_v35  ;;  %v1813_v22 = vmul.f32 -1.442695, %v979_v16  ;;  %v1814_v14 = vmul.f32 -1.442695, %v981_v24  ;;  %v3100_v35 = vld [vmem:[#allocation9_spill] sm:$0xff] }
 0x2fe   :  { %v935_v18 = vpop.f32.mrf.mxu0  ;;  %v976_v20 = vpop.f32.mrf.mxu1 }
 0x2ff   :  { %2015 = vpow2.f32 %v1813_v22  ;;  %v3101_v18 = vld [vmem:[#allocation11_spill] sm:$0xff] }
 0x300   :  { %2017 = vtanh.f32 %v980_v28 }
 0x301   :  { %2019 = vpow2.f32 %v1814_v14 }
 0x30a   :  { %v2014_v15 = vpop.eup %2013 }
 0x30b   :  { %v985_v12 = vadd.f32 1.0, %v2014_v15 }
 0x30c   :  { %v2016_v32 = vpop.eup %2015 }
 0x30d   :  { %2021 = vrcp.f32 %v985_v12  ;;  %v991_v13 = vadd.f32 1.0, %v2016_v32  ;;  %v2018_v62 = vpop.eup %2017  ;;  %v3102_v12 = vld [vmem:[#allocation12_spill] sm:$0xff]  ;;  %v3103_v32 = vld [vmem:[#allocation10_spill] sm:$0xff] }
 0x30e   :  { %v2020_v26 = vpop.eup %2019 }
 0x30f   :  { %2023 = vrcp.f32 %v991_v13  ;;  %v998_v17 = vadd.f32 1.0, %v2020_v26 }
 0x311   :  { %2025 = vrcp.f32 %v998_v17 }
 0x31a   :  { %v2022_v30 = vpop.eup %2021 }
 0x31b   :  { %v1002_v25 = vmul.f32 %v2022_v30, %v2018_v62 }
 0x31c   :  { %v2024_v19 = vpop.eup %2023 }
 0x31d   :  { %v1001_v23 = vmul.f32 %v2024_v19, %v2687_v29 }
 0x31e   :  { %v2026_v8 = vpop.eup %2025 }
 0x31f   :  { %v2729_v6 = vadd.f32 %v1002_v25, %v1001_v23 }
 0x321   :  { %2027 = vtanh.f32 %v2729_v6 }
 0x32e   :  { %v2028_v53 = vpop.eup %2027 }
 0x32f   :  { %v1005_v7 = vmul.f32 %v2028_v53, %v2026_v8 }
 0x331   :  { %v1006_v11 = vpack.c.bf16 %v1005_v7, %v1005_v7 }
 0x333   :  { %1047 = vmatmul.mubr.bf16.vlgmr.msra.gmra.mxu0 %v1006_v11  ;;  %1088 = vmatmul.mubr.bf16.vlgmr.msra.gmra.mxu1 %v1006_v11 }
 0x334   :  { %1133 = vmatpush1.bf16.msra.mxu0 %v2322_v36  ;;  %1174 = vmatpush1.bf16.msra.mxu1 %v2327_v37 }
 0x335   :  { %1134 = vmatprep.subr.bf16.mxu0 %v2334_v38  ;;  %1175 = vmatprep.subr.bf16.mxu1 %v2339_v39 }
 0x336   :  { %1164 = vmatprep.mubr.bf16.mxu0 %v3098_v10  ;;  %1205 = vmatprep.mubr.bf16.mxu1 %v3098_v10 }
 0x338   :  { %1135 = vmatpush1.bf16.msra.mxu0 %v2344_v40  ;;  %1176 = vmatpush1.bf16.msra.mxu1 %v2351_v41 }
 0x339   :  { %1136 = vmatprep.subr.bf16.mxu0 %v2358_v42  ;;  %1177 = vmatprep.subr.bf16.mxu1 %v2363_v43 }
 0x33c   :  { %1137 = vmatpush1.bf16.msra.mxu0 %v2373_v45  ;;  %1178 = vmatpush1.bf16.msra.mxu1 %v2378_v46 }
 0x33d   :  { %1138 = vmatprep.subr.bf16.mxu0 %v2385_v47  ;;  %1179 = vmatprep.subr.bf16.mxu1 %v2392_v48 }
 0x340   :  { %1139 = vmatpush1.bf16.msra.mxu0 %v2397_v49  ;;  %1180 = vmatpush1.bf16.msra.mxu1 %v2402_v50 }
 0x341   :  { %1140 = vmatprep.subr.bf16.mxu0 %v2409_v51  ;;  %1181 = vmatprep.subr.bf16.mxu1 %v2416_v52 }
 0x344   :  { %1141 = vmatpush1.bf16.msra.mxu0 %v2426_v54  ;;  %1182 = vmatpush1.bf16.msra.mxu1 %v2431_v55 }
 0x345   :  { %1142 = vmatprep.subr.bf16.mxu0 %v2436_v56  ;;  %1183 = vmatprep.subr.bf16.mxu1 %v2441_v57 }
 0x348   :  { %1143 = vmatpush1.bf16.msra.mxu0 %v2450_v58  ;;  %1184 = vmatpush1.bf16.msra.mxu1 %v2457_v59 }
 0x349   :  { %1144 = vmatprep.subr.bf16.mxu0 %v2464_v60  ;;  %1185 = vmatprep.subr.bf16.mxu1 %v2469_v61 }
 0x34c   :  { %1145 = vmatpush1.bf16.msra.mxu0 %v2481_v63  ;;  %1186 = vmatpush1.bf16.msra.mxu1 %v2486_v0 }
 0x34d   :  { %1146 = vmatprep.subr.bf16.mxu0 %v2493_v1  ;;  %1187 = vmatprep.subr.bf16.mxu1 %v2498_v3 }
 0x350   :  { %1147 = vmatpush1.bf16.msra.mxu0 %v2505_v4  ;;  %1188 = vmatpush1.bf16.msra.mxu1 %v2510_v5 }
 0x351   :  { %1250 = vmatprep.subr.bf16.mxu0 %v2309_v33  ;;  %1291 = vmatprep.subr.bf16.mxu1 %v2314_v34 }
 0x3f3   :  { %v1048_v29 = vpop.f32.mrf.mxu0  ;;  %v1089_v21 = vpop.f32.mrf.mxu1 }
 0x3f4   :  { %v1096_v16 = vadd.f32 %v1048_v29, %v3100_v35  ;;  %v1098_v34 = vadd.f32 %v1089_v21, %v3103_v32 }
 0x3f5   :  { %v1050_v9 = vpop.f32.mrf.mxu0  ;;  %v1091_v27 = vpop.f32.mrf.mxu1 }
 0x3f6   :  { %v1815_v22 = vmul.f32 -1.442695, %v1096_v16  ;;  %v1097_v20 = vadd.f32 %v1050_v9, %v3101_v18  ;;  %v1099_v33 = vadd.f32 %v1091_v27, %v3102_v12 }
 0x3f7   :  { %v1052_v24 = vpop.f32.mrf.mxu0  ;;  %v1093_v2 = vpop.f32.mrf.mxu1 }
 0x3f8   :  { %2029 = vpow2.f32 %v1815_v22  ;;  %v1816_v28 = vmul.f32 -1.442695, %v1097_v20  ;;  %v1817_v13 = vmul.f32 -1.442695, %v1099_v33 }
 0x3f9   :  { %v1053_v14 = vpop.f32.mrf.mxu0  ;;  %v1094_v15 = vpop.f32.mrf.mxu1 }
 0x3fa   :  { %2031 = vpow2.f32 %v1816_v28 }
 0x3fb   :  { %2033 = vtanh.f32 %v1098_v34 }
 0x3fc   :  { %2035 = vpow2.f32 %v1817_v13 }
 0x405   :  { %v2030_v62 = vpop.eup %2029 }
 0x406   :  { %v1103_v26 = vadd.f32 1.0, %v2030_v62 }
 0x407   :  { %v2032_v30 = vpop.eup %2031 }
 0x408   :  { %2037 = vrcp.f32 %v1103_v26  ;;  %v1109_v25 = vadd.f32 1.0, %v2032_v30  ;;  %v2034_v19 = vpop.eup %2033  ;;  %v2829_v26 = vld [vmem:[%s3072_s3 + $0xe0] ss:$16 sps:$4 sm:$0xff]   ;;  %v2835_v30 = vld [vmem:[%s3072_s3 + $0xe8] ss:$16 sps:$4 sm:$0xff]  }
 0x409   :  { %v2036_v17 = vpop.eup %2035 }
 0x40a   :  { %2039 = vrcp.f32 %v1109_v25  ;;  %v1116_v7 = vadd.f32 1.0, %v2036_v17  ;;  %v2841_v25 = vld [vmem:[%s3072_s3 + $0xc4] ss:$16 sps:$4 sm:$0xff]   ;;  %v2855_v17 = vld [vmem:[%s3072_s3 + $0xc0] ss:$16 sps:$4 sm:$0xff]  }
 0x40c   :  { %2041 = vrcp.f32 %v1116_v7  ;;  %v2879_v7 = vld [vmem:[%s3072_s3 + $0xa0] ss:$16 sps:$4 sm:$0xff]  }
 0x415   :  { %v2038_v23 = vpop.eup %2037 }
 0x416   :  { %v1120_v8 = vmul.f32 %v2038_v23, %v2034_v19  ;;  %v2847_v19 = vld [vmem:[%s3072_s3 + $0xcc] ss:$16 sps:$4 sm:$0xff]   ;;  %v2861_v23 = vld [vmem:[%s3072_s3 + $0xc8] ss:$16 sps:$4 sm:$0xff]  }
 0x417   :  { %v2040_v53 = vpop.eup %2039 }
 0x418   :  { %v1119_v11 = vmul.f32 %v2040_v53, %v2729_v6  ;;  %v2873_v53 = vld [vmem:[%s3072_s3 + $0xac] ss:$16 sps:$4 sm:$0xff]  }
 0x419   :  { %v2042_v21 = vpop.eup %2041 }
 0x41a   :  { %v2771_v29 = vadd.f32 %v1120_v8, %v1119_v11  ;;  %v2867_v8 = vld [vmem:[%s3072_s3 + $0xa4] ss:$16 sps:$4 sm:$0xff]   ;;  %v2885_v11 = vld [vmem:[%s3072_s3 + $0xa8] ss:$16 sps:$4 sm:$0xff]  }
 0x41c   :  { %2043 = vtanh.f32 %v2771_v29 }
 0x429   :  { %v2044_v35 = vpop.eup %2043 }
 0x42a   :  { %v1123_v16 = vmul.f32 %v2044_v35, %v2042_v21  ;;  %v2897_v21 = vld [vmem:[%s3072_s3 + $0x8c] ss:$16 sps:$4 sm:$0xff]   ;;  %v2903_v35 = vld [vmem:[%s3072_s3 + $0x80] ss:$16 sps:$4 sm:$0xff]  }
 0x42c   :  { %v1124_v9 = vpack.c.bf16 %v1123_v16, %v1123_v16  ;;  %v2909_v16 = vld [vmem:[%s3072_s3 + $0x88] ss:$16 sps:$4 sm:$0xff]  }
 0x42e   :  { %1165 = vmatmul.mubr.bf16.vlgmr.msra.gmra.mxu0 %v1124_v9  ;;  %1206 = vmatmul.mubr.bf16.vlgmr.msra.gmra.mxu1 %v1124_v9  ;;  %v2915_v9 = vld [vmem:[%s3072_s3 + $0x64] ss:$16 sps:$4 sm:$0xff]  }
 0x42f   :  { %1251 = vmatpush1.bf16.msra.mxu0 %v2322_v36  ;;  %1292 = vmatpush1.bf16.msra.mxu1 %v2327_v37  ;;  %v2809_v36 = vld [vmem:[%s3072_s3 + $0xe4] ss:$16 sps:$4 sm:$0xff]   ;;  %v2815_v37 = vld [vmem:[%s3072_s3 + $0xec] ss:$16 sps:$4 sm:$0xff]  }
 0x430   :  { %1252 = vmatprep.subr.bf16.mxu0 %v2334_v38  ;;  %1293 = vmatprep.subr.bf16.mxu1 %v2339_v39 }
 0x431   :  { %1282 = vmatprep.mubr.bf16.mxu0 %v3098_v10  ;;  %1323 = vmatprep.mubr.bf16.mxu1 %v3098_v10 }
 0x433   :  { %1253 = vmatpush1.bf16.msra.mxu0 %v2344_v40  ;;  %1294 = vmatpush1.bf16.msra.mxu1 %v2351_v41  ;;  %v3104_v40 = vld [vmem:[#allocation13_spill] sm:$0xff] }
 0x434   :  { %1254 = vmatprep.subr.bf16.mxu0 %v2358_v42  ;;  %1295 = vmatprep.subr.bf16.mxu1 %v2363_v43 }
 0x437   :  { %1255 = vmatpush1.bf16.msra.mxu0 %v2373_v45  ;;  %1296 = vmatpush1.bf16.msra.mxu1 %v2378_v46  ;;  %v3105_v46 = vld [vmem:[#allocation15_spill] sm:$0xff] }
 0x438   :  { %1256 = vmatprep.subr.bf16.mxu0 %v2385_v47  ;;  %1297 = vmatprep.subr.bf16.mxu1 %v2392_v48 }
 0x43b   :  { %1257 = vmatpush1.bf16.msra.mxu0 %v2397_v49  ;;  %1298 = vmatpush1.bf16.msra.mxu1 %v2402_v50 }
 0x43c   :  { %1258 = vmatprep.subr.bf16.mxu0 %v2409_v51  ;;  %1299 = vmatprep.subr.bf16.mxu1 %v2416_v52 }
 0x43f   :  { %1259 = vmatpush1.bf16.msra.mxu0 %v2426_v54  ;;  %1300 = vmatpush1.bf16.msra.mxu1 %v2431_v55  ;;  %v3106_v54 = vld [vmem:[#allocation16_spill] sm:$0xff] }
 0x440   :  { %1260 = vmatprep.subr.bf16.mxu0 %v2436_v56  ;;  %1301 = vmatprep.subr.bf16.mxu1 %v2441_v57  ;;  %v3107_v56 = vld [vmem:[#allocation14_spill] sm:$0xff] }
 0x443   :  { %1261 = vmatpush1.bf16.msra.mxu0 %v2450_v58  ;;  %1302 = vmatpush1.bf16.msra.mxu1 %v2457_v59 }
 0x444   :  { %1262 = vmatprep.subr.bf16.mxu0 %v2464_v60  ;;  %1303 = vmatprep.subr.bf16.mxu1 %v2469_v61 }
 0x447   :  { %1263 = vmatpush1.bf16.msra.mxu0 %v2481_v63  ;;  %1304 = vmatpush1.bf16.msra.mxu1 %v2486_v0 }
 0x448   :  { %1264 = vmatprep.subr.bf16.mxu0 %v2493_v1  ;;  %1305 = vmatprep.subr.bf16.mxu1 %v2498_v3 }
 0x44b   :  { %1265 = vmatpush1.bf16.msra.mxu0 %v2505_v4  ;;  %1306 = vmatpush1.bf16.msra.mxu1 %v2510_v5 }
 0x44c   :  { %1368 = vmatprep.subr.bf16.mxu0 %v2809_v36  ;;  %1409 = vmatprep.subr.bf16.mxu1 %v2815_v37 }
 0x4ee   :  { %v1166_v38 = vpop.f32.mrf.mxu0  ;;  %v1207_v39 = vpop.f32.mrf.mxu1 }
 0x4ef   :  { %v1214_v41 = vadd.f32 %v1166_v38, %v3104_v40  ;;  %v1216_v57 = vadd.f32 %v1207_v39, %v3107_v56  ;;  %v2921_v38 = vld [vmem:[%s3072_s3 + $0x6c] ss:$16 sps:$4 sm:$0xff]   ;;  %v2927_v39 = vld [vmem:[%s3072_s3 + $0x60] ss:$16 sps:$4 sm:$0xff]   ;;  %v2933_v40 = vld [vmem:[%s3072_s3 + $0x68] ss:$16 sps:$4 sm:$0xff]  }
 0x4f0   :  { %v1168_v42 = vpop.f32.mrf.mxu0  ;;  %v1209_v43 = vpop.f32.mrf.mxu1 }
 0x4f1   :  { %v1818_v45 = vmul.f32 -1.442695, %v1214_v41  ;;  %v1215_v47 = vadd.f32 %v1168_v42, %v3105_v46  ;;  %v1217_v55 = vadd.f32 %v1209_v43, %v3106_v54  ;;  %v2939_v41 = vld [vmem:[%s3072_s3 + $0x44] ss:$16 sps:$4 sm:$0xff]   ;;  %v2945_v42 = vld [vmem:[%s3072_s3 + $0x4c] ss:$16 sps:$4 sm:$0xff]  }
 0x4f2   :  { %v1170_v48 = vpop.f32.mrf.mxu0  ;;  %v1211_v49 = vpop.f32.mrf.mxu1  ;;  %v2951_v43 = vld [vmem:[%s3072_s3 + $0x40] ss:$16 sps:$4 sm:$0xff]  }
 0x4f3   :  { %2045 = vpow2.f32 %v1818_v45  ;;  %v1819_v50 = vmul.f32 -1.442695, %v1215_v47  ;;  %v1820_v58 = vmul.f32 -1.442695, %v1217_v55  ;;  %v3108_v45 = vld [vmem:[#allocation17_spill] sm:$0xff] }
 0x4f4   :  { %v1171_v51 = vpop.f32.mrf.mxu0  ;;  %v1212_v52 = vpop.f32.mrf.mxu1 }
 0x4f5   :  { %2047 = vpow2.f32 %v1819_v50  ;;  %v3111_v51 = vld [vmem:[#allocation18_spill] sm:$0xff] }
 0x4f6   :  { %2049 = vtanh.f32 %v1216_v57 }
 0x4f7   :  { %2051 = vpow2.f32 %v1820_v58 }
 0x500   :  { %v2046_v6 = vpop.eup %2045 }
 0x501   :  { %v1221_v27 = vadd.f32 1.0, %v2046_v6 }
 0x502   :  { %v2048_v22 = vpop.eup %2047 }
 0x503   :  { %2053 = vrcp.f32 %v1221_v27  ;;  %v1227_v18 = vadd.f32 1.0, %v2048_v22  ;;  %v2050_v20 = vpop.eup %2049 }
 0x504   :  { %v2052_v24 = vpop.eup %2051 }
 0x505   :  { %2055 = vrcp.f32 %v1227_v18  ;;  %v1234_v15 = vadd.f32 1.0, %v2052_v24 }
 0x507   :  { %2057 = vrcp.f32 %v1234_v15 }
 0x510   :  { %v2054_v2 = vpop.eup %2053 }
 0x511   :  { %v1238_v28 = vmul.f32 %v2054_v2, %v2050_v20 }
 0x512   :  { %v2056_v14 = vpop.eup %2055 }
 0x513   :  { %v1237_v12 = vmul.f32 %v2056_v14, %v2771_v29  ;;  %v2891_v29 = vld [vmem:[%s3072_s3 + $0x84] ss:$16 sps:$4 sm:$0xff]  }
 0x514   :  { %v2058_v32 = vpop.eup %2057 }
 0x515   :  { %v2823_v33 = vadd.f32 %v1238_v28, %v1237_v12 }
 0x517   :  { %2059 = vtanh.f32 %v2823_v33 }
 0x524   :  { %v2060_v34 = vpop.eup %2059 }
 0x525   :  { %v1241_v13 = vmul.f32 %v2060_v34, %v2058_v32  ;;  %v2134_v32 = vld [vmem:[%s3072_s3 + $0x2c] ss:$16 sps:$4 sm:$0xff]   ;;  %v2135_v34 = vld [vmem:[%s3072_s3 + $0x20] ss:$16 sps:$4 sm:$0xff]  }
 0x527   :  { %v1242_v62 = vpack.c.bf16 %v1241_v13, %v1241_v13  ;;  %v2136_v13 = vld [vmem:[%s3072_s3 + $0x28] ss:$16 sps:$4 sm:$0xff]  }
 0x529   :  { %1283 = vmatmul.mubr.bf16.vlgmr.msra.gmra.mxu0 %v1242_v62  ;;  %1324 = vmatmul.mubr.bf16.vlgmr.msra.gmra.mxu1 %v1242_v62  ;;  %v2137_v62 = vld [vmem:[%s3072_s3 + $0x4] ss:$16 sps:$4 sm:$0xff]  }
 0x52a   :  { %1369 = vmatpush1.bf16.msra.mxu0 %v2829_v26  ;;  %1410 = vmatpush1.bf16.msra.mxu1 %v2835_v30 }
 0x52b   :  { %1370 = vmatprep.subr.bf16.mxu0 %v2841_v25  ;;  %1411 = vmatprep.subr.bf16.mxu1 %v2847_v19 }
 0x52c   :  { %1400 = vmatprep.mubr.bf16.mxu0 %v3098_v10  ;;  %1441 = vmatprep.mubr.bf16.mxu1 %v3098_v10 }
 0x52e   :  { %1371 = vmatpush1.bf16.msra.mxu0 %v2855_v17  ;;  %1412 = vmatpush1.bf16.msra.mxu1 %v2861_v23 }
 0x52f   :  { %1372 = vmatprep.subr.bf16.mxu0 %v2867_v8  ;;  %1413 = vmatprep.subr.bf16.mxu1 %v2873_v53 }
 0x532   :  { %1373 = vmatpush1.bf16.msra.mxu0 %v2879_v7  ;;  %1414 = vmatpush1.bf16.msra.mxu1 %v2885_v11 }
 0x533   :  { %1374 = vmatprep.subr.bf16.mxu0 %v2891_v29  ;;  %1415 = vmatprep.subr.bf16.mxu1 %v2897_v21 }
 0x536   :  { %1375 = vmatpush1.bf16.msra.mxu0 %v2903_v35  ;;  %1416 = vmatpush1.bf16.msra.mxu1 %v2909_v16 }
 0x537   :  { %1376 = vmatprep.subr.bf16.mxu0 %v2915_v9  ;;  %1417 = vmatprep.subr.bf16.mxu1 %v2921_v38 }
 0x53a   :  { %1377 = vmatpush1.bf16.msra.mxu0 %v2927_v39  ;;  %1418 = vmatpush1.bf16.msra.mxu1 %v2933_v40 }
 0x53b   :  { %1378 = vmatprep.subr.bf16.mxu0 %v2939_v41  ;;  %1419 = vmatprep.subr.bf16.mxu1 %v2945_v42 }
 0x53e   :  { %1379 = vmatpush1.bf16.msra.mxu0 %v2951_v43  ;;  %1420 = vmatpush1.bf16.msra.mxu1 %v2457_v59 }
 0x53f   :  { %1380 = vmatprep.subr.bf16.mxu0 %v2464_v60  ;;  %1421 = vmatprep.subr.bf16.mxu1 %v2469_v61 }
 0x542   :  { %1381 = vmatpush1.bf16.msra.mxu0 %v2481_v63  ;;  %1422 = vmatpush1.bf16.msra.mxu1 %v2486_v0  ;;  %v3109_v0 = vld [vmem:[#allocation19_spill] sm:$0xff] }
 0x543   :  { %1382 = vmatprep.subr.bf16.mxu0 %v2493_v1  ;;  %1423 = vmatprep.subr.bf16.mxu1 %v2498_v3 }
 0x546   :  { %1383 = vmatpush1.bf16.msra.mxu0 %v2505_v4  ;;  %1424 = vmatpush1.bf16.msra.mxu1 %v2510_v5  ;;  %v3110_v5 = vld [vmem:[#allocation20_spill] sm:$0xff] }
 0x547   :  { %1486 = vmatprep.subr.bf16.mxu0 %v2809_v36  ;;  %1527 = vmatprep.subr.bf16.mxu1 %v2815_v37 }
 0x5e9   :  { %v1284_v59 = vpop.f32.mrf.mxu0  ;;  %v1325_v60 = vpop.f32.mrf.mxu1 }
 0x5ea   :  { %v1332_v61 = vadd.f32 %v1284_v59, %v3108_v45  ;;  %v1334_v37 = vadd.f32 %v1325_v60, %v3111_v51 }
 0x5eb   :  { %v1286_v46 = vpop.f32.mrf.mxu0  ;;  %v1327_v63 = vpop.f32.mrf.mxu1 }
 0x5ec   :  { %v1821_v47 = vmul.f32 -1.442695, %v1332_v61  ;;  %v1333_v48 = vadd.f32 %v1286_v46, %v3109_v0  ;;  %v1335_v36 = vadd.f32 %v1327_v63, %v3110_v5 }
 0x5ed   :  { %v1288_v1 = vpop.f32.mrf.mxu0  ;;  %v1329_v49 = vpop.f32.mrf.mxu1 }
 0x5ee   :  { %2061 = vpow2.f32 %v1821_v47  ;;  %v1822_v3 = vmul.f32 -1.442695, %v1333_v48  ;;  %v1823_v52 = vmul.f32 -1.442695, %v1335_v36 }
 0x5ef   :  { %v1289_v4 = vpop.f32.mrf.mxu0  ;;  %v1330_v50 = vpop.f32.mrf.mxu1 }
 0x5f0   :  { %2063 = vpow2.f32 %v1822_v3 }
 0x5f1   :  { %2065 = vtanh.f32 %v1334_v37  ;;  %v1973_v37 = vld [vmem:[%s3073_s4 + $0x38] sm:$0xff]  }
 0x5f2   :  { %2067 = vpow2.f32 %v1823_v52  ;;  %v2165_v52 = vmov 0.0  }
 0x5fb   :  { %v2062_v54 = vpop.eup %2061 }
 0x5fc   :  { %v1339_v55 = vadd.f32 1.0, %v2062_v54  ;;  %v1974_v54 = vld [vmem:[%s3073_s4 + $0x30] sm:$0xff]  }
 0x5fd   :  { %v2064_v56 = vpop.eup %2063 }
 0x5fe   :  { %2069 = vrcp.f32 %v1339_v55  ;;  %v1345_v57 = vadd.f32 1.0, %v2064_v56  ;;  %v2066_v58 = vpop.eup %2065  ;;  %v1975_v55 = vld [vmem:[%s3073_s4 + $0x28] sm:$0xff]   ;;  %v1976_v56 = vld [vmem:[%s3073_s4 + $0x20] sm:$0xff]  }
 0x5ff   :  { %v2068_v6 = vpop.eup %2067 }
 0x600   :  { %2071 = vrcp.f32 %v1345_v57  ;;  %v1352_v20 = vadd.f32 1.0, %v2068_v6  ;;  %v1977_v57 = vld [vmem:[%s3073_s4 + $0x18] sm:$0xff]   ;;  %v1979_v6 = vld [vmem:[%s3073_s4 + $0x8] sm:$0xff]  }
 0x602   :  { %2073 = vrcp.f32 %v1352_v20  ;;  %v3116_v20 = vld [vmem:[#allocation25_spill] sm:$0xff] }
 0x60b   :  { %v2070_v27 = vpop.eup %2069 }
 0x60c   :  { %v1356_v22 = vmul.f32 %v2070_v27, %v2066_v58  ;;  %v1978_v58 = vld [vmem:[%s3073_s4 + $0x10] sm:$0xff]   ;;  %v1980_v27 = vld [vmem:[%s3073_s4] sm:$0xff]  }
 0x60d   :  { %v2072_v18 = vpop.eup %2071 }
 0x60e   :  { %v1355_v24 = vmul.f32 %v2072_v18, %v2823_v33  ;;  %v2133_v33 = vld [vmem:[%s3072_s3 + $0x24] ss:$16 sps:$4 sm:$0xff]  }
 0x60f   :  { %v2074_v28 = vpop.eup %2073 }
 0x610   :  { %v2970_v2 = vadd.f32 %v1356_v22, %v1355_v24 }
 0x612   :  { %2075 = vtanh.f32 %v2970_v2 }
 0x61f   :  { %v2076_v14 = vpop.eup %2075 }
 0x620   :  { %v1359_v15 = vmul.f32 %v2076_v14, %v2074_v28 }
 0x622   :  { %v1360_v12 = vpack.c.bf16 %v1359_v15, %v1359_v15 }
 0x624   :  { %1401 = vmatmul.mubr.bf16.vlgmr.msra.gmra.mxu0 %v1360_v12  ;;  %1442 = vmatmul.mubr.bf16.vlgmr.msra.gmra.mxu1 %v1360_v12 }
 0x625   :  { %1487 = vmatpush1.bf16.msra.mxu0 %v2829_v26  ;;  %1528 = vmatpush1.bf16.msra.mxu1 %v2835_v30  ;;  %v2138_v26 = vld [vmem:[%s3072_s3 + $0xc] ss:$16 sps:$4 sm:$0xff]   ;;  %v2139_v30 = vld [vmem:[%s3072_s3] ss:$16 sps:$4 sm:$0xff]  }
 0x626   :  { %1488 = vmatprep.subr.bf16.mxu0 %v2841_v25  ;;  %1529 = vmatprep.subr.bf16.mxu1 %v2847_v19  ;;  %v2140_v25 = vld [vmem:[%s3072_s3 + $0x8] ss:$16 sps:$4 sm:$0xff]  }
 0x627   :  { %1518 = vmatprep.mubr.bf16.mxu0 %v3098_v10  ;;  %1559 = vmatprep.mubr.bf16.mxu1 %v3098_v10  ;;  %v2132_v10 = vld [vmem:[%s3072_s3 + $0x48] ss:$16 sps:$4 sm:$0xff]  }
 0x629   :  { %1489 = vmatpush1.bf16.msra.mxu0 %v2855_v17  ;;  %1530 = vmatpush1.bf16.msra.mxu1 %v2861_v23  ;;  %v3112_v23 = vld [vmem:[#allocation21_spill] sm:$0xff] }
 0x62a   :  { %1490 = vmatprep.subr.bf16.mxu0 %v2867_v8  ;;  %1531 = vmatprep.subr.bf16.mxu1 %v2873_v53 }
 0x62d   :  { %1491 = vmatpush1.bf16.msra.mxu0 %v2879_v7  ;;  %1532 = vmatpush1.bf16.msra.mxu1 %v2885_v11 }
 0x62e   :  { %1492 = vmatprep.subr.bf16.mxu0 %v2891_v29  ;;  %1533 = vmatprep.subr.bf16.mxu1 %v2897_v21  ;;  %v3113_v29 = vld [vmem:[#allocation23_spill] sm:$0xff] }
 0x631   :  { %1493 = vmatpush1.bf16.msra.mxu0 %v2903_v35  ;;  %1534 = vmatpush1.bf16.msra.mxu1 %v2909_v16 }
 0x632   :  { %1494 = vmatprep.subr.bf16.mxu0 %v2915_v9  ;;  %1535 = vmatprep.subr.bf16.mxu1 %v2921_v38 }
 0x635   :  { %1495 = vmatpush1.bf16.msra.mxu0 %v2927_v39  ;;  %1536 = vmatpush1.bf16.msra.mxu1 %v2933_v40  ;;  %v3114_v40 = vld [vmem:[#allocation24_spill] sm:$0xff] }
 0x636   :  { %1496 = vmatprep.subr.bf16.mxu0 %v2939_v41  ;;  %1537 = vmatprep.subr.bf16.mxu1 %v2945_v42  ;;  %v3115_v42 = vld [vmem:[#allocation22_spill] sm:$0xff] }
 0x639   :  { %1497 = vmatpush1.bf16.msra.mxu0 %v2951_v43  ;;  %1538 = vmatpush1.bf16.msra.mxu1 %v2132_v10 }
 0x63a   :  { %1498 = vmatprep.subr.bf16.mxu0 %v2133_v33  ;;  %1539 = vmatprep.subr.bf16.mxu1 %v2134_v32 }
 0x63d   :  { %1499 = vmatpush1.bf16.msra.mxu0 %v2135_v34  ;;  %1540 = vmatpush1.bf16.msra.mxu1 %v2136_v13 }
 0x63e   :  { %1500 = vmatprep.subr.bf16.mxu0 %v2137_v62  ;;  %1541 = vmatprep.subr.bf16.mxu1 %v2138_v26  ;;  %v3117_v62 = vld [vmem:[#allocation26_spill] sm:$0xff] }
 0x641   :  { %1501 = vmatpush1.bf16.msra.mxu0 %v2139_v30  ;;  %1542 = vmatpush1.bf16.msra.mxu1 %v2140_v25 }
 0x642   :  { %1848 = vmatprep.subr.bf16.mxu0 %v2165_v52 }
 0x6e4   :  { %v1402_v19 = vpop.f32.mrf.mxu0  ;;  %v1443_v17 = vpop.f32.mrf.mxu1 }
 0x6e5   :  { %v1450_v8 = vadd.f32 %v1402_v19, %v3112_v23  ;;  %v1452_v43 = vadd.f32 %v1443_v17, %v3115_v42 }
 0x6e6   :  { %v1404_v53 = vpop.f32.mrf.mxu0  ;;  %v1445_v7 = vpop.f32.mrf.mxu1 }
 0x6e7   :  { %v1824_v11 = vmul.f32 -1.442695, %v1450_v8  ;;  %v1451_v21 = vadd.f32 %v1404_v53, %v3113_v29  ;;  %v1453_v41 = vadd.f32 %v1445_v7, %v3114_v40 }
 0x6e8   :  { %v1406_v35 = vpop.f32.mrf.mxu0  ;;  %v1447_v16 = vpop.f32.mrf.mxu1 }
 0x6e9   :  { %2077 = vpow2.f32 %v1824_v11  ;;  %v1825_v9 = vmul.f32 -1.442695, %v1451_v21  ;;  %v1826_v59 = vmul.f32 -1.442695, %v1453_v41  ;;  %v1714_v41 = vld [vmem:[%s3075_s6] sm:$0xff] }
 0x6ea   :  { %v1407_v38 = vpop.f32.mrf.mxu0  ;;  %v1448_v39 = vpop.f32.mrf.mxu1 }
 0x6eb   :  { %2079 = vpow2.f32 %v1825_v9  ;;  %v1830_v39 = vld [vmem:[%s3074_s5] ss:$0 sm:$0xff] }
 0x6ec   :  { %2081 = vtanh.f32 %v1452_v43 }
 0x6ed   :  { %2083 = vpow2.f32 %v1826_v59 }
 0x6f6   :  { %v2078_v60 = vpop.eup %2077 }
 0x6f7   :  { %v1457_v45 = vadd.f32 1.0, %v2078_v60 }
 0x6f8   :  { %v2080_v61 = vpop.eup %2079 }
 0x6f9   :  { %2085 = vrcp.f32 %v1457_v45  ;;  %v1463_v46 = vadd.f32 1.0, %v2080_v61  ;;  %v2082_v63 = vpop.eup %2081 }
 0x6fa   :  { %v2084_v47 = vpop.eup %2083 }
 0x6fb   :  { %2087 = vrcp.f32 %v1463_v46  ;;  %v1470_v49 = vadd.f32 1.0, %v2084_v47 }
 0x6fd   :  { %2089 = vrcp.f32 %v1470_v49 }
 0x706   :  { %v2086_v0 = vpop.eup %2085 }
 0x707   :  { %v1474_v48 = vmul.f32 %v2086_v0, %v2082_v63 }
 0x708   :  { %v2088_v1 = vpop.eup %2087 }
 0x709   :  { %v1473_v3 = vmul.f32 %v2088_v1, %v2970_v2 }
 0x70a   :  { %v2090_v50 = vpop.eup %2089 }
 0x70b   :  { %v3028_v4 = vadd.f32 %v1474_v48, %v1473_v3 }
 0x70d   :  { %2091 = vtanh.f32 %v3028_v4 }
 0x71a   :  { %v2092_v5 = vpop.eup %2091 }
 0x71b   :  { %v1477_v36 = vmul.f32 %v2092_v5, %v2090_v50 }
 0x71d   :  { %v1478_v51 = vpack.c.bf16 %v1477_v36, %v1477_v36 }
 0x71f   :  { %1519 = vmatmul.mubr.bf16.vlgmr.msra.gmra.mxu0 %v1478_v51  ;;  %1560 = vmatmul.mubr.bf16.vlgmr.msra.gmra.mxu1 %v1478_v51 }
 0x720   :  { %1849 = vmatpush3.bf16.msra.mxu0 %v1973_v37  ;;  %1864 = vmatprep.mubr.msk.bf16.mxu0 %vm2166_vm0, %v2165_v52 }
 0x721   :  { %1850 = vmatprep.subr.bf16.mxu0 %v2165_v52 }
 0x724   :  { %1851 = vmatpush3.bf16.msra.mxu0 %v1974_v54 }
 0x725   :  { %1852 = vmatprep.subr.bf16.mxu0 %v2165_v52 }
 0x728   :  { %1853 = vmatpush3.bf16.msra.mxu0 %v1975_v55 }
 0x729   :  { %1854 = vmatprep.subr.bf16.mxu0 %v2165_v52 }
 0x72c   :  { %1855 = vmatpush3.bf16.msra.mxu0 %v1976_v56 }
 0x72d   :  { %1856 = vmatprep.subr.bf16.mxu0 %v2165_v52 }
 0x730   :  { %1857 = vmatpush3.bf16.msra.mxu0 %v1977_v57 }
 0x731   :  { %1858 = vmatprep.subr.bf16.mxu0 %v2165_v52 }
 0x734   :  { %1859 = vmatpush3.bf16.msra.mxu0 %v1978_v58 }
 0x735   :  { %1860 = vmatprep.subr.bf16.mxu0 %v2165_v52 }
 0x738   :  { %1861 = vmatpush3.bf16.msra.mxu0 %v1979_v6 }
 0x739   :  { %1862 = vmatprep.subr.bf16.mxu0 %v2165_v52 }
 0x73c   :  { %1863 = vmatpush3.bf16.msra.mxu0 %v1980_v27 }
 0x7df   :  { %v1520_v22 = vpop.f32.mrf.mxu0  ;;  %v1561_v18 = vpop.f32.mrf.mxu1 }
 0x7e0   :  { %v1568_v24 = vadd.f32 %v1520_v22, %v3116_v20  ;;  %v1570_v26 = vadd.f32 %v1561_v18, %v3117_v62 }
 0x7e1   :  { %v1522_v2 = vpop.f32.mrf.mxu0  ;;  %v1563_v28 = vpop.f32.mrf.mxu1 }
 0x7e2   :  { %v1827_v14 = vmul.f32 -1.442695, %v1568_v24  ;;  %v1569_v15 = vadd.f32 %v1522_v2, %v2635_v31  ;;  %v1571_v13 = vadd.f32 %v1563_v28, %v2638_v44 }
 0x7e3   :  { %v1524_v12 = vpop.f32.mrf.mxu0  ;;  %v1565_v10 = vpop.f32.mrf.mxu1 }
 0x7e4   :  { %2093 = vpow2.f32 %v1827_v14  ;;  %v1828_v33 = vmul.f32 -1.442695, %v1569_v15  ;;  %v1829_v30 = vmul.f32 -1.442695, %v1571_v13 }
 0x7e5   :  { %v1525_v32 = vpop.f32.mrf.mxu0  ;;  %v1566_v34 = vpop.f32.mrf.mxu1 }
 0x7e6   :  { %2095 = vpow2.f32 %v1828_v33 }
 0x7e7   :  { %2097 = vtanh.f32 %v1570_v26 }
 0x7e8   :  { %2099 = vpow2.f32 %v1829_v30 }
 0x7f1   :  { %v2094_v25 = vpop.eup %2093 }
 0x7f2   :  { %v1575_v19 = vadd.f32 1.0, %v2094_v25 }
 0x7f3   :  { %v2096_v17 = vpop.eup %2095 }
 0x7f4   :  { %2101 = vrcp.f32 %v1575_v19  ;;  %v1581_v23 = vadd.f32 1.0, %v2096_v17  ;;  %v2098_v31 = vpop.eup %2097 }
 0x7f5   :  { %v2100_v8 = vpop.eup %2099 }
 0x7f6   :  { %2103 = vrcp.f32 %v1581_v23  ;;  %v1588_v29 = vadd.f32 1.0, %v2100_v8 }
 0x7f8   :  { %2105 = vrcp.f32 %v1588_v29 }
 0x801   :  { %v2102_v53 = vpop.eup %2101 }
 0x802   :  { %v1592_v7 = vmul.f32 %v2102_v53, %v2098_v31 }
 0x803   :  { %v2104_v11 = vpop.eup %2103 }
 0x804   :  { %v1591_v21 = vmul.f32 %v2104_v11, %v3028_v4 }
 0x805   :  { %v2106_v35 = vpop.eup %2105 }
 0x806   :  { %v1593_v44 = vadd.f32 %v1592_v7, %v1591_v21 }
 0x808   :  { %2107 = vtanh.f32 %v1593_v44 }
 0x815   :  { %v2108_v16 = vpop.eup %2107 }
 0x816   :  { %v1595_v9 = vmul.f32 %v2108_v16, %v2106_v35 }
 0x818   :  { %v1596_v38 = vpack.c.bf16 %v1595_v9, %v1595_v9 }
 0x81a   :  { %1865 = vmatmul.mubr.bf16.vlgmr.msra.gmra.mxu0 %v1596_v38 }
 0x8da   :  { %v1708_v40 = vpop.f32.mrf.mxu0 }
 0x8db   :  { %v1709_v42 = vadd.f32 %v1830_v39, %v1708_v40 }
 0x8dc   :  { %v1866_v43 = vpop.f32.mrf.mxu0 }
 0x8dd   :  { %v1715_v59 = vadd.f32 %v1714_v41, %v1709_v42 }
 0x8de   :  { %v1711_v60 = vpop.f32.mrf.mxu0 }
 0x8df   :  { %1716 = vst [vmem:[#allocation5] sm:$0xff] %v1715_v59 }
 0x8e0   :  { %v1867_v45 = vpop.f32.mrf.mxu0 }
 0x8e1   :  { %2152 = shalt.err (!%p2149_p4)
}
 0x8e2   :  { %1726 = dma.vmem_to_hbm [thread:$0]  %s1724_s24, 128, %s3076_s7, [#allocation6]  }
 0x8e3   :  { %2161 = dma.done.wait [#allocation6], 128  }
 0x8e4   :  { %2162 = vsyncadd [#allocation6], 4294967168 }
 0x8e5   :  { %1730 = vsyncpa [#allocation6], 1 }

</bundles_post_ra>
